<compile_context>
chip_gen: v7x
topology: tpu7x:2x2x1
jax: 0.10.0
libtpu: 0.0.40
codegen_flags: <defaults>
</compile_context>

<pallas_src>
import functools

import jax
import jax.numpy as jnp
from jax import lax
from jax.experimental import pallas as pl
from jax.experimental.pallas import tpu as pltpu


# ----------------------------------------------------------------------------
# batch-per-grid-step selection (v7x: 2 TCs -> grid over batch; v5e/v6e: 1 TC
# -> fold the batch into one body so independent chains interleave).
# ----------------------------------------------------------------------------
def _batch_per_grid_step(batch):
    try:
        kind = jax.devices()[0].device_kind.lower()
    except Exception:
        return 1
    single_tc = ("v5e", "v5 lite", "v5litepod", "v6e", "v6 lite")
    if any(t in kind for t in single_tc):
        return batch
    return 1  # v7x / megacore parts: keep grid=(B,) with "parallel" semantics


# ----------------------------------------------------------------------------
# Fused kernel: all TraceNet layers, `nb` batch elements per invocation.
# ----------------------------------------------------------------------------
def _tracenet_kernel(x_ref, mrow_ref, mcol_ref, L0_ref,
                     Wcat_ref, bcat_ref, Wbig_ref, batt_ref, v_ref, vg_ref,
                     h_out, L_out, A_out):
    nb, S, _ = x_ref.shape
    NL, _, F = batt_ref.shape
    f32 = jnp.float32
    cdt = Wcat_ref.dtype                    # MXU operand dtype (bfloat16)

    # identity pattern: keeps the sort-free sparsemax robust if the row / col
    # score computations disagree by an ulp (guarantees k_star >= 1).
    ri = lax.broadcasted_iota(jnp.int32, (S, S), 0)
    ci = lax.broadcasted_iota(jnp.int32, (S, S), 1)
    eye = ri == ci

    Wcat = Wcat_ref[...]                    # (H, (NL+1)F)
    bcat = bcat_ref[...]                    # (1, (NL+1)F)
    Wbig = Wbig_ref[...]                    # ((NL+1)F, 3*NL*F)

    # Static Python loop over batch elements: on 1-TC chips both independent
    # chains live in the same basic block and the LLO scheduler interleaves.
    for b in range(nb):
        x = x_ref[b]                                     # (S, H)  bf16
        mrow = (1.0 - mrow_ref[b]) * -10000.0            # (1, S)  f32
        mcol = (1.0 - mcol_ref[b]) * -10000.0            # (S, 1)  f32
        L = L0_ref[b]                                    # (1, S)  f32

        # ---------------- prologue: x-only projections (off the chain) -------
        ca = jnp.dot(x, Wcat, preferred_element_type=f32) + bcat
        ca = jnp.maximum(ca, 0.0)                        # [C0 | A0 | A1 | A2]
        ca_c = ca.astype(cdt)
        # one block-structured dot -> per layer: C_l@W2_l, A_l@W2_l, C_l@W1_l
        big = jnp.dot(ca_c, Wbig, preferred_element_type=f32)   # (S, 3*NL*F)
        cw2 = [big[:, (2 * l) * F:(2 * l + 1) * F] for l in range(NL)]
        aw2 = [big[:, (2 * l + 1) * F:(2 * l + 2) * F] for l in range(NL)]
        cw1 = [big[:, (2 * NL + l) * F:(2 * NL + l + 1) * F].astype(cdt)
               for l in range(NL)]
        Cb = [ca_c[:, l * F:(l + 1) * F] for l in range(NL)]    # C_l (bf16)

        h_list = []
        L_list = []
        # ---------------- serial attention / sparsemax chain -----------------
        for l in range(NL):
            batt = batt_ref[l]                                        # (1, F)
            # w1(q) with q = C^T L folded:  (L@C)@W1 == L@(C@W1)
            qW1 = jnp.dot(L.astype(cdt), cw1[l],
                          preferred_element_type=f32)                 # (1, F)
            e1 = jnp.tanh(qW1 + cw2[l] + batt)                        # (S, F)
            a = lax.dot_general(v_ref[l], e1.astype(cdt),
                                (((1,), (1,)), ((), ())),
                                preferred_element_type=f32)           # (1, S)
            a = a + mrow
            a = a - jnp.max(a, axis=-1, keepdims=True)
            p = jnp.exp(a)
            alpha = p * pl.reciprocal(jnp.sum(p, axis=-1, keepdims=True),
                                      approx=True)                    # (1, S)
            alpha_c = alpha.astype(cdt)
            # h = C^T @ alpha (output only; not on the critical path)
            h = jnp.dot(alpha_c, Cb[l], preferred_element_type=f32)   # (1, F)
            # w1(h) folded:  (alpha@C)@W1 == alpha@(C@W1)
            hW1 = jnp.dot(alpha_c, cw1[l], preferred_element_type=f32)
            e2 = jnp.tanh(hW1 + aw2[l] + batt)                        # (S, F)
            e2c = e2.astype(cdt)
            vg = vg_ref[l]                  # layer gate folded into v
            z_row = lax.dot_general(vg, e2c, (((1,), (1,)), ((), ())),
                                    preferred_element_type=f32) + mrow  # (1,S)
            # column orientation on the VPU (mul + lane reduce) -- MXU stays
            # free; any ulp-level mismatch with z_row is absorbed by `eye`.
            z_col = jnp.sum(e2c.astype(f32) * vg.astype(f32),
                            axis=-1, keepdims=True) + mcol              # (S,1)

            # ---- sparsemax over the sequence (sort-free formulation) --------
            geq = jnp.where(jnp.logical_or(z_col >= z_row, eye), 1.0, 0.0)
            k_row = jnp.sum(geq, axis=0, keepdims=True)                  # (1,S)
            s_row = jnp.sum(z_col * geq, axis=0, keepdims=True)          # (1,S)
            valid = 1.0 + k_row * z_row > s_row
            k_star = jnp.max(jnp.where(valid, k_row, 0.0),
                             axis=-1, keepdims=True)                     # (1,1)
            in_sup = k_row <= k_star
            s_star = jnp.sum(jnp.where(in_sup, z_row, 0.0),
                             axis=-1, keepdims=True)                     # (1,1)
            tau = (s_star - 1.0) / k_star
            L = jnp.maximum(z_row - tau, 0.0)                            # (1,S)

            h_list.append(h)
            L_list.append(L)

        # ---------------- epilogue: one packed store per output --------------
        h_out[b] = jnp.concatenate(h_list, axis=0)       # (NL, F)
        L_out[b] = jnp.concatenate(L_list, axis=0)       # (NL, S)
        A_out[b] = ca[:, F:]                             # (S, NL*F) = [A0|A1|A2]


# ----------------------------------------------------------------------------
# TraceNetModel forward: one fused pallas_call.
# ----------------------------------------------------------------------------
def tracenet_model(attention_mask, hidden_states, item_weights, layers_params,
                   proactive_masking=False,
                   output_hidden_states=True, output_item_weights=True,
                   mxu_dtype=jnp.bfloat16):
    if proactive_masking:
        # TODO(synk): stochastic proactive_mask (torch.bernoulli) not implemented.
        raise NotImplementedError("proactive_masking=True is not supported")

    f32 = jnp.float32
    B, S, H = hidden_states.shape
    NL = len(layers_params)
    F = layers_params[0]["Wa"].shape[1]

    # tiny host-side prep; heavier mask extension etc. happens in-kernel.
    m = attention_mask.astype(f32).reshape(B, S)
    mask_row = m.reshape(B, 1, S)
    mask_col = m.reshape(B, S, 1)
    L0_row = item_weights.astype(f32).reshape(B, 1, S)

    def _gate(i, p):
        w1, w2, w3 = p["w_1"], p["w_2"], p["w_3"]
        if i == 0:
            gx = w3 ** 2 - w2 ** 2 - w1 ** 2
        elif i == 1:
            gx = w3 ** 2 - w2 ** 2
        elif i == 2:
            gx = w3 ** 2
        else:
            raise ValueError("TraceNet defines layer gates for at most 3 layers")
        return jax.nn.sigmoid(gx)

    # fused x-projection:  x @ [Wc0 | Wa0 | ... | Wa_{NL-1}]  (weights stored
    # pre-transposed so x @ W == nn.Linear(x))
    Wcat = jnp.concatenate([layers_params[0]["Wc"]]
                           + [p["Wa"] for p in layers_params], axis=1)
    bcat = jnp.concatenate([layers_params[0]["bc"]]
                           + [p["ba"] for p in layers_params], axis=1)

    # Block-structured weights so ONE prologue dot gives, per layer l:
    #   cols [2l*F,(2l+1)F)    : C_l @ W2_l
    #   cols [(2l+1)F,(2l+2)F) : A_l @ W2_l
    #   cols [(2NL+l)F, ... )  : C_l @ W1_l
    # with row block i corresponding to proj_i = [C0, A0, A1, ...][i].
    Wbig = jnp.zeros(((NL + 1) * F, 3 * NL * F), f32)
    for l, p in enumerate(layers_params):
        Wbig = Wbig.at[l * F:(l + 1) * F,
                       (2 * l) * F:(2 * l + 1) * F].set(p["W2"])
        Wbig = Wbig.at[(l + 1) * F:(l + 2) * F,
                       (2 * l + 1) * F:(2 * l + 2) * F].set(p["W2"])
        Wbig = Wbig.at[l * F:(l + 1) * F,
                       (2 * NL + l) * F:(2 * NL + l + 1) * F].set(p["W1"])

    batt_s = jnp.stack([p["b_att"] for p in layers_params]).astype(f32)
    v_s = jnp.stack([p["v"] for p in layers_params]).astype(mxu_dtype)
    # scalar layer gate folded into the second attention's scoring vector.
    vg_s = jnp.stack([p["v"] * _gate(i, p)
                      for i, p in enumerate(layers_params)]).astype(mxu_dtype)

    x = hidden_states.astype(mxu_dtype)
    Wcat = Wcat.astype(mxu_dtype)
    Wbig = Wbig.astype(mxu_dtype)
    bcat = bcat.astype(f32)

    nb = _batch_per_grid_step(B)
    grid = (B // nb,)

    in_specs = [
        pl.BlockSpec((nb, S, H), lambda g: (g, 0, 0)),               # x
        pl.BlockSpec((nb, 1, S), lambda g: (g, 0, 0)),               # mask (row)
        pl.BlockSpec((nb, S, 1), lambda g: (g, 0, 0)),               # mask (col)
        pl.BlockSpec((nb, 1, S), lambda g: (g, 0, 0)),               # item_weights
        pl.BlockSpec((H, (NL + 1) * F), lambda g: (0, 0)),           # Wcat
        pl.BlockSpec((1, (NL + 1) * F), lambda g: (0, 0)),           # bcat
        pl.BlockSpec(((NL + 1) * F, 3 * NL * F), lambda g: (0, 0)),  # Wbig
        pl.BlockSpec((NL, 1, F), lambda g: (0, 0, 0)),               # b_att
        pl.BlockSpec((NL, 1, F), lambda g: (0, 0, 0)),               # v
        pl.BlockSpec((NL, 1, F), lambda g: (0, 0, 0)),               # v * gate
    ]
    out_shape = (
        jax.ShapeDtypeStruct((B, NL, F), f32),        # h per layer (row form)
        jax.ShapeDtypeStruct((B, NL, S), f32),        # item weights per layer
        jax.ShapeDtypeStruct((B, S, NL * F), f32),    # [A0 | A1 | A2]
    )
    out_specs = (
        pl.BlockSpec((nb, NL, F), lambda g: (g, 0, 0)),
        pl.BlockSpec((nb, NL, S), lambda g: (g, 0, 0)),
        pl.BlockSpec((nb, S, NL * F), lambda g: (g, 0, 0)),
    )

    h_all, L_all, A_all = pl.pallas_call(
        _tracenet_kernel,
        grid=grid,
        in_specs=in_specs,
        out_specs=out_specs,
        out_shape=out_shape,
        compiler_params=pltpu.CompilerParams(
            dimension_semantics=("parallel",)),
    )(x, mask_row, mask_col, L0_row, Wcat, bcat, Wbig, batt_s, v_s, vg_s)

    # ---- assemble TraceNetModel output tuples (reference layout) ------------
    all_hidden = (hidden_states,) if output_hidden_states else ()
    all_item = (item_weights,) if output_item_weights else ()
    all_A_hat = ()
    for l in range(NL):
        if output_hidden_states:
            all_hidden = all_hidden + (jnp.reshape(h_all[:, l], (B, F, 1)),)
            all_A_hat = all_A_hat + (A_all[:, :, l * F:(l + 1) * F],)
        if output_item_weights:
            all_item = all_item + (jnp.reshape(L_all[:, l], (B, S, 1)),)

    outputs = ()
    if output_hidden_states:
        outputs = outputs + (all_hidden,)
        outputs = outputs + (all_A_hat,)
    if output_item_weights:
        outputs = outputs + (all_item,)
    return outputs


# ----------------------------------------------------------------------------
# Deterministic synthetic parameters (shapes per TraceNetLayer.__init__).
# Linear weights stored pre-transposed: kernel computes x @ W (== x @ weight.T).
# ----------------------------------------------------------------------------
def init_layer_params(key, hidden_size, output_feature):
    ks = jax.random.split(key, 7)

    def rnd(k, shape, scale=0.1):
        return scale * jax.random.normal(k, shape, jnp.float32)

    return dict(
        Wc=rnd(ks[0], (hidden_size, output_feature)),
        bc=rnd(ks[1], (1, output_feature)),
        Wa=rnd(ks[2], (hidden_size, output_feature)),
        ba=rnd(ks[3], (1, output_feature)),
        W1=rnd(ks[4], (output_feature, output_feature)),
        W2=rnd(ks[5], (output_feature, output_feature)),
        b_att=jnp.zeros((1, output_feature), jnp.float32),   # nn.Parameter(zeros)
        v=rnd(ks[6], (1, output_feature)),
        w_1=jnp.ones((), jnp.float32),                       # nn.Parameter(ones)
        w_2=jnp.ones((), jnp.float32),
        w_3=jnp.ones((), jnp.float32),
    )


if __name__ == "__main__":
    B, S, H, F = 2, 8, 32, 16            # batch, seq, hidden_size, output_feature
    num_hubo_layers = 3

    key = jax.random.PRNGKey(0)
    k_x, k_w, k_p = jax.random.split(key, 3)

    hidden_states = jax.random.normal(k_x, (B, S, H), jnp.float32)
    attention_mask = jnp.ones((B, S), jnp.float32).at[:, -2:].set(0.0)  # 2 pad toks
    item_weights = jax.nn.softmax(
        jax.random.normal(k_w, (B, S, 1), jnp.float32), axis=1)

    layers_params = [init_layer_params(jax.random.fold_in(k_p, l), H, F)
                     for l in range(num_hubo_layers)]

    run = jax.jit(functools.partial(tracenet_model,
                                    output_hidden_states=True,
                                    output_item_weights=True))
    outputs = run(attention_mask, hidden_states, item_weights, layers_params)
    jax.block_until_ready(outputs)
    print("KERNEL_OK")
</pallas_src>

<mosaic_0001>
module attributes {stable_mosaic.version = 11 : i64} {
  func.func @_tracenet_kernel(%arg0: i32, %arg1: memref<1x8x32xbf16, #tpu.memory_space<vmem>>, %arg2: memref<1x1x8xf32, #tpu.memory_space<vmem>>, %arg3: memref<1x8x1xf32, #tpu.memory_space<vmem>>, %arg4: memref<1x1x8xf32, #tpu.memory_space<vmem>>, %arg5: memref<32x64xbf16, #tpu.memory_space<vmem>>, %arg6: memref<1x64xf32, #tpu.memory_space<vmem>>, %arg7: memref<64x144xbf16, #tpu.memory_space<vmem>>, %arg8: memref<3x1x16xf32, #tpu.memory_space<vmem>>, %arg9: memref<3x1x16xbf16, #tpu.memory_space<vmem>>, %arg10: memref<3x1x16xbf16, #tpu.memory_space<vmem>>, %arg11: memref<1x3x16xf32, #tpu.memory_space<vmem>>, %arg12: memref<1x3x8xf32, #tpu.memory_space<vmem>>, %arg13: memref<1x8x48xf32, #tpu.memory_space<vmem>>) attributes {dimension_semantics = [#tpu.dimension_semantics<parallel>], iteration_bounds = array<i64: 2>, scalar_prefetch = 0 : i64, scratch_operands = 0 : i64, tpu.core_type = #tpu.core_type<tc>, window_params = [{transform_indices = @transform_0, window_bounds = array<i64: 1, 8, 32>}, {transform_indices = @transform_1, window_bounds = array<i64: 1, 1, 8>}, {transform_indices = @transform_2, window_bounds = array<i64: 1, 8, 1>}, {transform_indices = @transform_3, window_bounds = array<i64: 1, 1, 8>}, {pipeline_mode = #tpu.pipeline_mode<synchronous>, transform_indices = @transform_4, window_bounds = array<i64: 32, 64>}, {pipeline_mode = #tpu.pipeline_mode<synchronous>, transform_indices = @transform_5, window_bounds = array<i64: 1, 64>}, {pipeline_mode = #tpu.pipeline_mode<synchronous>, transform_indices = @transform_6, window_bounds = array<i64: 64, 144>}, {pipeline_mode = #tpu.pipeline_mode<synchronous>, transform_indices = @transform_7, window_bounds = array<i64: 3, 1, 16>}, {pipeline_mode = #tpu.pipeline_mode<synchronous>, transform_indices = @transform_8, window_bounds = array<i64: 3, 1, 16>}, {pipeline_mode = #tpu.pipeline_mode<synchronous>, transform_indices = @transform_9, window_bounds = array<i64: 3, 1, 16>}, {transform_indices = @transform_10, window_bounds = array<i64: 1, 3, 16>}, {transform_indices = @transform_11, window_bounds = array<i64: 1, 3, 8>}, {transform_indices = @transform_12, window_bounds = array<i64: 1, 8, 48>}]} {
    %0 = tpu.iota {dimensions = array<i32: 0>} : vector<8x8xi32>
    %1 = tpu.iota {dimensions = array<i32: 1>} : vector<8x8xi32>
    %2 = arith.cmpi eq, %0, %1 : vector<8x8xi32>
    %c0 = arith.constant 0 : index
    %c0_0 = arith.constant 0 : index
    %3 = vector.load %arg5[%c0, %c0_0] : memref<32x64xbf16, #tpu.memory_space<vmem>>, vector<32x64xbf16>
    %c0_1 = arith.constant 0 : index
    %c0_2 = arith.constant 0 : index
    %4 = vector.load %arg6[%c0_1, %c0_2] : memref<1x64xf32, #tpu.memory_space<vmem>>, vector<1x64xf32>
    %c0_3 = arith.constant 0 : index
    %c0_4 = arith.constant 0 : index
    %5 = vector.load %arg7[%c0_3, %c0_4] : memref<64x144xbf16, #tpu.memory_space<vmem>>, vector<64x144xbf16>
    %c0_5 = arith.constant 0 : index
    %c0_6 = arith.constant 0 : index
    %c0_7 = arith.constant 0 : index
    %6 = vector.load %arg1[%c0_5, %c0_6, %c0_7] : memref<1x8x32xbf16, #tpu.memory_space<vmem>>, vector<1x8x32xbf16>
    %7 = vector.shape_cast %6 : vector<1x8x32xbf16> to vector<8x32xbf16>
    %c0_8 = arith.constant 0 : index
    %c0_9 = arith.constant 0 : index
    %c0_10 = arith.constant 0 : index
    %8 = vector.load %arg2[%c0_8, %c0_9, %c0_10] : memref<1x1x8xf32, #tpu.memory_space<vmem>>, vector<1x1x8xf32>
    %9 = vector.shape_cast %8 : vector<1x1x8xf32> to vector<1x8xf32>
    %cst = arith.constant 1.000000e+00 : f32
    %10 = vector.broadcast %cst : f32 to vector<1x8xf32>
    %11 = arith.subf %10, %9 : vector<1x8xf32>
    %cst_11 = arith.constant -1.000000e+04 : f32
    %12 = vector.broadcast %cst_11 : f32 to vector<1x8xf32>
    %13 = arith.mulf %11, %12 : vector<1x8xf32>
    %c0_12 = arith.constant 0 : index
    %c0_13 = arith.constant 0 : index
    %c0_14 = arith.constant 0 : index
    %14 = vector.load %arg3[%c0_12, %c0_13, %c0_14] : memref<1x8x1xf32, #tpu.memory_space<vmem>>, vector<1x8x1xf32>
    %15 = vector.shape_cast %14 : vector<1x8x1xf32> to vector<8x1xf32>
    %cst_15 = arith.constant 1.000000e+00 : f32
    %16 = vector.broadcast %cst_15 : f32 to vector<8x1xf32>
    %17 = arith.subf %16, %15 : vector<8x1xf32>
    %cst_16 = arith.constant -1.000000e+04 : f32
    %18 = vector.broadcast %cst_16 : f32 to vector<8x1xf32>
    %19 = arith.mulf %17, %18 : vector<8x1xf32>
    %c0_17 = arith.constant 0 : index
    %c0_18 = arith.constant 0 : index
    %c0_19 = arith.constant 0 : index
    %20 = vector.load %arg4[%c0_17, %c0_18, %c0_19] : memref<1x1x8xf32, #tpu.memory_space<vmem>>, vector<1x1x8xf32>
    %21 = vector.shape_cast %20 : vector<1x1x8xf32> to vector<1x8xf32>
    %cst_20 = arith.constant dense<0.000000e+00> : vector<8x64xf32>
    %22 = tpu.matmul %7, %3, %cst_20 {dimension_numbers = #tpu.dot_dimension_numbers<[1], [0], [0], [1], [0, 0, 1, 1], [], []>} : vector<8x32xbf16>, vector<32x64xbf16>, vector<8x64xf32> -> vector<8x64xf32>
    %23 = vector.broadcast %4 : vector<1x64xf32> to vector<8x64xf32>
    %24 = arith.addf %22, %23 : vector<8x64xf32>
    %cst_21 = arith.constant 0.000000e+00 : f32
    %25 = vector.broadcast %cst_21 : f32 to vector<8x64xf32>
    %26 = arith.maximumf %24, %25 : vector<8x64xf32>
    %27 = arith.truncf %26 : vector<8x64xf32> to vector<8x64xbf16>
    %cst_22 = arith.constant dense<0.000000e+00> : vector<8x144xf32>
    %28 = tpu.matmul %27, %5, %cst_22 {dimension_numbers = #tpu.dot_dimension_numbers<[1], [0], [0], [1], [0, 0, 1, 1], [], []>} : vector<8x64xbf16>, vector<64x144xbf16>, vector<8x144xf32> -> vector<8x144xf32>
    %29 = vector.extract_strided_slice %28 {offsets = [0, 0], sizes = [8, 16], strides = [1, 1]} : vector<8x144xf32> to vector<8x16xf32>
    %30 = vector.extract_strided_slice %28 {offsets = [0, 32], sizes = [8, 16], strides = [1, 1]} : vector<8x144xf32> to vector<8x16xf32>
    %31 = vector.extract_strided_slice %28 {offsets = [0, 64], sizes = [8, 16], strides = [1, 1]} : vector<8x144xf32> to vector<8x16xf32>
    %32 = vector.extract_strided_slice %28 {offsets = [0, 16], sizes = [8, 16], strides = [1, 1]} : vector<8x144xf32> to vector<8x16xf32>
    %33 = vector.extract_strided_slice %28 {offsets = [0, 48], sizes = [8, 16], strides = [1, 1]} : vector<8x144xf32> to vector<8x16xf32>
    %34 = vector.extract_strided_slice %28 {offsets = [0, 80], sizes = [8, 16], strides = [1, 1]} : vector<8x144xf32> to vector<8x16xf32>
    %35 = vector.extract_strided_slice %28 {offsets = [0, 96], sizes = [8, 16], strides = [1, 1]} : vector<8x144xf32> to vector<8x16xf32>
    %36 = arith.truncf %35 : vector<8x16xf32> to vector<8x16xbf16>
    %37 = vector.extract_strided_slice %28 {offsets = [0, 112], sizes = [8, 16], strides = [1, 1]} : vector<8x144xf32> to vector<8x16xf32>
    %38 = arith.truncf %37 : vector<8x16xf32> to vector<8x16xbf16>
    %39 = vector.extract_strided_slice %28 {offsets = [0, 128], sizes = [8, 16], strides = [1, 1]} : vector<8x144xf32> to vector<8x16xf32>
    %40 = arith.truncf %39 : vector<8x16xf32> to vector<8x16xbf16>
    %41 = vector.extract_strided_slice %27 {offsets = [0, 0], sizes = [8, 16], strides = [1, 1]} : vector<8x64xbf16> to vector<8x16xbf16>
    %42 = vector.extract_strided_slice %27 {offsets = [0, 16], sizes = [8, 16], strides = [1, 1]} : vector<8x64xbf16> to vector<8x16xbf16>
    %43 = vector.extract_strided_slice %27 {offsets = [0, 32], sizes = [8, 16], strides = [1, 1]} : vector<8x64xbf16> to vector<8x16xbf16>
    %c0_23 = arith.constant 0 : index
    %c0_24 = arith.constant 0 : index
    %c0_25 = arith.constant 0 : index
    %44 = vector.load %arg8[%c0_23, %c0_24, %c0_25] : memref<3x1x16xf32, #tpu.memory_space<vmem>>, vector<1x1x16xf32>
    %45 = vector.shape_cast %44 : vector<1x1x16xf32> to vector<1x16xf32>
    %46 = arith.truncf %21 : vector<1x8xf32> to vector<1x8xbf16>
    %cst_26 = arith.constant dense<0.000000e+00> : vector<1x16xf32>
    %47 = tpu.matmul %46, %36, %cst_26 {dimension_numbers = #tpu.dot_dimension_numbers<[1], [0], [0], [1], [0, 0, 1, 1], [], []>} : vector<1x8xbf16>, vector<8x16xbf16>, vector<1x16xf32> -> vector<1x16xf32>
    %48 = vector.broadcast %47 : vector<1x16xf32> to vector<8x16xf32>
    %49 = arith.addf %48, %29 : vector<8x16xf32>
    %50 = vector.broadcast %45 : vector<1x16xf32> to vector<8x16xf32>
    %51 = arith.addf %49, %50 : vector<8x16xf32>
    %52 = math.tanh %51 : vector<8x16xf32>
    %c0_27 = arith.constant 0 : index
    %c0_28 = arith.constant 0 : index
    %c0_29 = arith.constant 0 : index
    %53 = vector.load %arg9[%c0_27, %c0_28, %c0_29] : memref<3x1x16xbf16, #tpu.memory_space<vmem>>, vector<1x1x16xbf16>
    %54 = vector.shape_cast %53 : vector<1x1x16xbf16> to vector<1x16xbf16>
    %55 = arith.truncf %52 : vector<8x16xf32> to vector<8x16xbf16>
    %cst_30 = arith.constant dense<0.000000e+00> : vector<1x8xf32>
    %56 = tpu.matmul %54, %55, %cst_30 {dimension_numbers = #tpu.dot_dimension_numbers<[1], [1], [0], [0], [0, 0, 1, 0], [], []>} : vector<1x16xbf16>, vector<8x16xbf16>, vector<1x8xf32> -> vector<1x8xf32>
    %57 = arith.addf %56, %13 : vector<1x8xf32>
    %cst_31 = arith.constant dense<0xFF800000> : vector<1xf32>
    %58 = vector.multi_reduction <maximumf>, %57, %cst_31 [1] : vector<1x8xf32> to vector<1xf32>
    %59 = vector.shape_cast %58 : vector<1xf32> to vector<1x1xf32>
    %60 = vector.broadcast %59 : vector<1x1xf32> to vector<1x8xf32>
    %61 = arith.subf %57, %60 : vector<1x8xf32>
    %62 = math.exp %61 : vector<1x8xf32>
    %cst_32 = arith.constant dense<0.000000e+00> : vector<1xf32>
    %63 = vector.multi_reduction <add>, %62, %cst_32 [1] : vector<1x8xf32> to vector<1xf32>
    %64 = vector.shape_cast %63 : vector<1xf32> to vector<1x1xf32>
    %65 = tpu.reciprocal %64 {approx = true} : vector<1x1xf32> -> vector<1x1xf32>
    %66 = vector.broadcast %65 : vector<1x1xf32> to vector<1x8xf32>
    %67 = arith.mulf %62, %66 : vector<1x8xf32>
    %68 = arith.truncf %67 : vector<1x8xf32> to vector<1x8xbf16>
    %cst_33 = arith.constant dense<0.000000e+00> : vector<1x16xf32>
    %69 = tpu.matmul %68, %41, %cst_33 {dimension_numbers = #tpu.dot_dimension_numbers<[1], [0], [0], [1], [0, 0, 1, 1], [], []>} : vector<1x8xbf16>, vector<8x16xbf16>, vector<1x16xf32> -> vector<1x16xf32>
    %cst_34 = arith.constant dense<0.000000e+00> : vector<1x16xf32>
    %70 = tpu.matmul %68, %36, %cst_34 {dimension_numbers = #tpu.dot_dimension_numbers<[1], [0], [0], [1], [0, 0, 1, 1], [], []>} : vector<1x8xbf16>, vector<8x16xbf16>, vector<1x16xf32> -> vector<1x16xf32>
    %71 = vector.broadcast %70 : vector<1x16xf32> to vector<8x16xf32>
    %72 = arith.addf %71, %32 : vector<8x16xf32>
    %73 = vector.broadcast %45 : vector<1x16xf32> to vector<8x16xf32>
    %74 = arith.addf %72, %73 : vector<8x16xf32>
    %75 = math.tanh %74 : vector<8x16xf32>
    %76 = arith.truncf %75 : vector<8x16xf32> to vector<8x16xbf16>
    %c0_35 = arith.constant 0 : index
    %c0_36 = arith.constant 0 : index
    %c0_37 = arith.constant 0 : index
    %77 = vector.load %arg10[%c0_35, %c0_36, %c0_37] : memref<3x1x16xbf16, #tpu.memory_space<vmem>>, vector<1x1x16xbf16>
    %78 = vector.shape_cast %77 : vector<1x1x16xbf16> to vector<1x16xbf16>
    %cst_38 = arith.constant dense<0.000000e+00> : vector<1x8xf32>
    %79 = tpu.matmul %78, %76, %cst_38 {dimension_numbers = #tpu.dot_dimension_numbers<[1], [1], [0], [0], [0, 0, 1, 0], [], []>} : vector<1x16xbf16>, vector<8x16xbf16>, vector<1x8xf32> -> vector<1x8xf32>
    %80 = arith.addf %79, %13 : vector<1x8xf32>
    %81 = arith.extf %76 : vector<8x16xbf16> to vector<8x16xf32>
    %82 = arith.extf %78 : vector<1x16xbf16> to vector<1x16xf32>
    %83 = vector.broadcast %82 : vector<1x16xf32> to vector<8x16xf32>
    %84 = arith.mulf %81, %83 : vector<8x16xf32>
    %cst_39 = arith.constant dense<0.000000e+00> : vector<8xf32>
    %85 = vector.multi_reduction <add>, %84, %cst_39 [1] : vector<8x16xf32> to vector<8xf32>
    %86 = vector.shape_cast %85 : vector<8xf32> to vector<8x1xf32>
    %87 = arith.addf %86, %19 : vector<8x1xf32>
    %88 = vector.broadcast %87 : vector<8x1xf32> to vector<8x8xf32>
    %89 = vector.broadcast %80 : vector<1x8xf32> to vector<8x8xf32>
    %90 = arith.cmpf oge, %88, %89 : vector<8x8xf32>
    %91 = arith.ori %90, %2 : vector<8x8xi1>
    %cst_40 = arith.constant 1.000000e+00 : f32
    %cst_41 = arith.constant 0.000000e+00 : f32
    %92 = vector.broadcast %cst_40 : f32 to vector<8x8xf32>
    %93 = vector.broadcast %cst_41 : f32 to vector<8x8xf32>
    %94 = arith.select %91, %92, %93 : vector<8x8xi1>, vector<8x8xf32>
    %cst_42 = arith.constant dense<0.000000e+00> : vector<8xf32>
    %95 = vector.multi_reduction <add>, %94, %cst_42 [0] : vector<8x8xf32> to vector<8xf32>
    %96 = vector.shape_cast %95 : vector<8xf32> to vector<1x8xf32>
    %97 = vector.broadcast %87 : vector<8x1xf32> to vector<8x8xf32>
    %98 = arith.mulf %97, %94 : vector<8x8xf32>
    %cst_43 = arith.constant dense<0.000000e+00> : vector<8xf32>
    %99 = vector.multi_reduction <add>, %98, %cst_43 [0] : vector<8x8xf32> to vector<8xf32>
    %100 = vector.shape_cast %99 : vector<8xf32> to vector<1x8xf32>
    %101 = arith.mulf %96, %80 : vector<1x8xf32>
    %cst_44 = arith.constant 1.000000e+00 : f32
    %102 = vector.broadcast %cst_44 : f32 to vector<1x8xf32>
    %103 = arith.addf %102, %101 : vector<1x8xf32>
    %104 = arith.cmpf ogt, %103, %100 : vector<1x8xf32>
    %cst_45 = arith.constant 0.000000e+00 : f32
    %105 = vector.broadcast %cst_45 : f32 to vector<1x8xf32>
    %106 = arith.select %104, %96, %105 : vector<1x8xi1>, vector<1x8xf32>
    %cst_46 = arith.constant dense<0xFF800000> : vector<1xf32>
    %107 = vector.multi_reduction <maximumf>, %106, %cst_46 [1] : vector<1x8xf32> to vector<1xf32>
    %108 = vector.shape_cast %107 : vector<1xf32> to vector<1x1xf32>
    %109 = vector.broadcast %108 : vector<1x1xf32> to vector<1x8xf32>
    %110 = arith.cmpf ole, %96, %109 : vector<1x8xf32>
    %cst_47 = arith.constant 0.000000e+00 : f32
    %111 = vector.broadcast %cst_47 : f32 to vector<1x8xf32>
    %112 = arith.select %110, %80, %111 : vector<1x8xi1>, vector<1x8xf32>
    %cst_48 = arith.constant dense<0.000000e+00> : vector<1xf32>
    %113 = vector.multi_reduction <add>, %112, %cst_48 [1] : vector<1x8xf32> to vector<1xf32>
    %114 = vector.shape_cast %113 : vector<1xf32> to vector<1x1xf32>
    %cst_49 = arith.constant 1.000000e+00 : f32
    %115 = vector.broadcast %cst_49 : f32 to vector<1x1xf32>
    %116 = arith.subf %114, %115 : vector<1x1xf32>
    %117 = arith.divf %116, %108 : vector<1x1xf32>
    %118 = vector.broadcast %117 : vector<1x1xf32> to vector<1x8xf32>
    %119 = arith.subf %80, %118 : vector<1x8xf32>
    %cst_50 = arith.constant 0.000000e+00 : f32
    %120 = vector.broadcast %cst_50 : f32 to vector<1x8xf32>
    %121 = arith.maximumf %119, %120 : vector<1x8xf32>
    %c1 = arith.constant 1 : index
    %c0_51 = arith.constant 0 : index
    %c0_52 = arith.constant 0 : index
    %122 = vector.load %arg8[%c1, %c0_51, %c0_52] : memref<3x1x16xf32, #tpu.memory_space<vmem>>, vector<1x1x16xf32>
    %123 = vector.shape_cast %122 : vector<1x1x16xf32> to vector<1x16xf32>
    %124 = arith.truncf %121 : vector<1x8xf32> to vector<1x8xbf16>
    %cst_53 = arith.constant dense<0.000000e+00> : vector<1x16xf32>
    %125 = tpu.matmul %124, %38, %cst_53 {dimension_numbers = #tpu.dot_dimension_numbers<[1], [0], [0], [1], [0, 0, 1, 1], [], []>} : vector<1x8xbf16>, vector<8x16xbf16>, vector<1x16xf32> -> vector<1x16xf32>
    %126 = vector.broadcast %125 : vector<1x16xf32> to vector<8x16xf32>
    %127 = arith.addf %126, %30 : vector<8x16xf32>
    %128 = vector.broadcast %123 : vector<1x16xf32> to vector<8x16xf32>
    %129 = arith.addf %127, %128 : vector<8x16xf32>
    %130 = math.tanh %129 : vector<8x16xf32>
    %c1_54 = arith.constant 1 : index
    %c0_55 = arith.constant 0 : index
    %c0_56 = arith.constant 0 : index
    %131 = vector.load %arg9[%c1_54, %c0_55, %c0_56] : memref<3x1x16xbf16, #tpu.memory_space<vmem>>, vector<1x1x16xbf16>
    %132 = vector.shape_cast %131 : vector<1x1x16xbf16> to vector<1x16xbf16>
    %133 = arith.truncf %130 : vector<8x16xf32> to vector<8x16xbf16>
    %cst_57 = arith.constant dense<0.000000e+00> : vector<1x8xf32>
    %134 = tpu.matmul %132, %133, %cst_57 {dimension_numbers = #tpu.dot_dimension_numbers<[1], [1], [0], [0], [0, 0, 1, 0], [], []>} : vector<1x16xbf16>, vector<8x16xbf16>, vector<1x8xf32> -> vector<1x8xf32>
    %135 = arith.addf %134, %13 : vector<1x8xf32>
    %cst_58 = arith.constant dense<0xFF800000> : vector<1xf32>
    %136 = vector.multi_reduction <maximumf>, %135, %cst_58 [1] : vector<1x8xf32> to vector<1xf32>
    %137 = vector.shape_cast %136 : vector<1xf32> to vector<1x1xf32>
    %138 = vector.broadcast %137 : vector<1x1xf32> to vector<1x8xf32>
    %139 = arith.subf %135, %138 : vector<1x8xf32>
    %140 = math.exp %139 : vector<1x8xf32>
    %cst_59 = arith.constant dense<0.000000e+00> : vector<1xf32>
    %141 = vector.multi_reduction <add>, %140, %cst_59 [1] : vector<1x8xf32> to vector<1xf32>
    %142 = vector.shape_cast %141 : vector<1xf32> to vector<1x1xf32>
    %143 = tpu.reciprocal %142 {approx = true} : vector<1x1xf32> -> vector<1x1xf32>
    %144 = vector.broadcast %143 : vector<1x1xf32> to vector<1x8xf32>
    %145 = arith.mulf %140, %144 : vector<1x8xf32>
    %146 = arith.truncf %145 : vector<1x8xf32> to vector<1x8xbf16>
    %cst_60 = arith.constant dense<0.000000e+00> : vector<1x16xf32>
    %147 = tpu.matmul %146, %42, %cst_60 {dimension_numbers = #tpu.dot_dimension_numbers<[1], [0], [0], [1], [0, 0, 1, 1], [], []>} : vector<1x8xbf16>, vector<8x16xbf16>, vector<1x16xf32> -> vector<1x16xf32>
    %cst_61 = arith.constant dense<0.000000e+00> : vector<1x16xf32>
    %148 = tpu.matmul %146, %38, %cst_61 {dimension_numbers = #tpu.dot_dimension_numbers<[1], [0], [0], [1], [0, 0, 1, 1], [], []>} : vector<1x8xbf16>, vector<8x16xbf16>, vector<1x16xf32> -> vector<1x16xf32>
    %149 = vector.broadcast %148 : vector<1x16xf32> to vector<8x16xf32>
    %150 = arith.addf %149, %33 : vector<8x16xf32>
    %151 = vector.broadcast %123 : vector<1x16xf32> to vector<8x16xf32>
    %152 = arith.addf %150, %151 : vector<8x16xf32>
    %153 = math.tanh %152 : vector<8x16xf32>
    %154 = arith.truncf %153 : vector<8x16xf32> to vector<8x16xbf16>
    %c1_62 = arith.constant 1 : index
    %c0_63 = arith.constant 0 : index
    %c0_64 = arith.constant 0 : index
    %155 = vector.load %arg10[%c1_62, %c0_63, %c0_64] : memref<3x1x16xbf16, #tpu.memory_space<vmem>>, vector<1x1x16xbf16>
    %156 = vector.shape_cast %155 : vector<1x1x16xbf16> to vector<1x16xbf16>
    %cst_65 = arith.constant dense<0.000000e+00> : vector<1x8xf32>
    %157 = tpu.matmul %156, %154, %cst_65 {dimension_numbers = #tpu.dot_dimension_numbers<[1], [1], [0], [0], [0, 0, 1, 0], [], []>} : vector<1x16xbf16>, vector<8x16xbf16>, vector<1x8xf32> -> vector<1x8xf32>
    %158 = arith.addf %157, %13 : vector<1x8xf32>
    %159 = arith.extf %154 : vector<8x16xbf16> to vector<8x16xf32>
    %160 = arith.extf %156 : vector<1x16xbf16> to vector<1x16xf32>
    %161 = vector.broadcast %160 : vector<1x16xf32> to vector<8x16xf32>
    %162 = arith.mulf %159, %161 : vector<8x16xf32>
    %cst_66 = arith.constant dense<0.000000e+00> : vector<8xf32>
    %163 = vector.multi_reduction <add>, %162, %cst_66 [1] : vector<8x16xf32> to vector<8xf32>
    %164 = vector.shape_cast %163 : vector<8xf32> to vector<8x1xf32>
    %165 = arith.addf %164, %19 : vector<8x1xf32>
    %166 = vector.broadcast %165 : vector<8x1xf32> to vector<8x8xf32>
    %167 = vector.broadcast %158 : vector<1x8xf32> to vector<8x8xf32>
    %168 = arith.cmpf oge, %166, %167 : vector<8x8xf32>
    %169 = arith.ori %168, %2 : vector<8x8xi1>
    %cst_67 = arith.constant 1.000000e+00 : f32
    %cst_68 = arith.constant 0.000000e+00 : f32
    %170 = vector.broadcast %cst_67 : f32 to vector<8x8xf32>
    %171 = vector.broadcast %cst_68 : f32 to vector<8x8xf32>
    %172 = arith.select %169, %170, %171 : vector<8x8xi1>, vector<8x8xf32>
    %cst_69 = arith.constant dense<0.000000e+00> : vector<8xf32>
    %173 = vector.multi_reduction <add>, %172, %cst_69 [0] : vector<8x8xf32> to vector<8xf32>
    %174 = vector.shape_cast %173 : vector<8xf32> to vector<1x8xf32>
    %175 = vector.broadcast %165 : vector<8x1xf32> to vector<8x8xf32>
    %176 = arith.mulf %175, %172 : vector<8x8xf32>
    %cst_70 = arith.constant dense<0.000000e+00> : vector<8xf32>
    %177 = vector.multi_reduction <add>, %176, %cst_70 [0] : vector<8x8xf32> to vector<8xf32>
    %178 = vector.shape_cast %177 : vector<8xf32> to vector<1x8xf32>
    %179 = arith.mulf %174, %158 : vector<1x8xf32>
    %cst_71 = arith.constant 1.000000e+00 : f32
    %180 = vector.broadcast %cst_71 : f32 to vector<1x8xf32>
    %181 = arith.addf %180, %179 : vector<1x8xf32>
    %182 = arith.cmpf ogt, %181, %178 : vector<1x8xf32>
    %cst_72 = arith.constant 0.000000e+00 : f32
    %183 = vector.broadcast %cst_72 : f32 to vector<1x8xf32>
    %184 = arith.select %182, %174, %183 : vector<1x8xi1>, vector<1x8xf32>
    %cst_73 = arith.constant dense<0xFF800000> : vector<1xf32>
    %185 = vector.multi_reduction <maximumf>, %184, %cst_73 [1] : vector<1x8xf32> to vector<1xf32>
    %186 = vector.shape_cast %185 : vector<1xf32> to vector<1x1xf32>
    %187 = vector.broadcast %186 : vector<1x1xf32> to vector<1x8xf32>
    %188 = arith.cmpf ole, %174, %187 : vector<1x8xf32>
    %cst_74 = arith.constant 0.000000e+00 : f32
    %189 = vector.broadcast %cst_74 : f32 to vector<1x8xf32>
    %190 = arith.select %188, %158, %189 : vector<1x8xi1>, vector<1x8xf32>
    %cst_75 = arith.constant dense<0.000000e+00> : vector<1xf32>
    %191 = vector.multi_reduction <add>, %190, %cst_75 [1] : vector<1x8xf32> to vector<1xf32>
    %192 = vector.shape_cast %191 : vector<1xf32> to vector<1x1xf32>
    %cst_76 = arith.constant 1.000000e+00 : f32
    %193 = vector.broadcast %cst_76 : f32 to vector<1x1xf32>
    %194 = arith.subf %192, %193 : vector<1x1xf32>
    %195 = arith.divf %194, %186 : vector<1x1xf32>
    %196 = vector.broadcast %195 : vector<1x1xf32> to vector<1x8xf32>
    %197 = arith.subf %158, %196 : vector<1x8xf32>
    %cst_77 = arith.constant 0.000000e+00 : f32
    %198 = vector.broadcast %cst_77 : f32 to vector<1x8xf32>
    %199 = arith.maximumf %197, %198 : vector<1x8xf32>
    %c2 = arith.constant 2 : index
    %c0_78 = arith.constant 0 : index
    %c0_79 = arith.constant 0 : index
    %200 = vector.load %arg8[%c2, %c0_78, %c0_79] : memref<3x1x16xf32, #tpu.memory_space<vmem>>, vector<1x1x16xf32>
    %201 = vector.shape_cast %200 : vector<1x1x16xf32> to vector<1x16xf32>
    %202 = arith.truncf %199 : vector<1x8xf32> to vector<1x8xbf16>
    %cst_80 = arith.constant dense<0.000000e+00> : vector<1x16xf32>
    %203 = tpu.matmul %202, %40, %cst_80 {dimension_numbers = #tpu.dot_dimension_numbers<[1], [0], [0], [1], [0, 0, 1, 1], [], []>} : vector<1x8xbf16>, vector<8x16xbf16>, vector<1x16xf32> -> vector<1x16xf32>
    %204 = vector.broadcast %203 : vector<1x16xf32> to vector<8x16xf32>
    %205 = arith.addf %204, %31 : vector<8x16xf32>
    %206 = vector.broadcast %201 : vector<1x16xf32> to vector<8x16xf32>
    %207 = arith.addf %205, %206 : vector<8x16xf32>
    %208 = math.tanh %207 : vector<8x16xf32>
    %c2_81 = arith.constant 2 : index
    %c0_82 = arith.constant 0 : index
    %c0_83 = arith.constant 0 : index
    %209 = vector.load %arg9[%c2_81, %c0_82, %c0_83] : memref<3x1x16xbf16, #tpu.memory_space<vmem>>, vector<1x1x16xbf16>
    %210 = vector.shape_cast %209 : vector<1x1x16xbf16> to vector<1x16xbf16>
    %211 = arith.truncf %208 : vector<8x16xf32> to vector<8x16xbf16>
    %cst_84 = arith.constant dense<0.000000e+00> : vector<1x8xf32>
    %212 = tpu.matmul %210, %211, %cst_84 {dimension_numbers = #tpu.dot_dimension_numbers<[1], [1], [0], [0], [0, 0, 1, 0], [], []>} : vector<1x16xbf16>, vector<8x16xbf16>, vector<1x8xf32> -> vector<1x8xf32>
    %213 = arith.addf %212, %13 : vector<1x8xf32>
    %cst_85 = arith.constant dense<0xFF800000> : vector<1xf32>
    %214 = vector.multi_reduction <maximumf>, %213, %cst_85 [1] : vector<1x8xf32> to vector<1xf32>
    %215 = vector.shape_cast %214 : vector<1xf32> to vector<1x1xf32>
    %216 = vector.broadcast %215 : vector<1x1xf32> to vector<1x8xf32>
    %217 = arith.subf %213, %216 : vector<1x8xf32>
    %218 = math.exp %217 : vector<1x8xf32>
    %cst_86 = arith.constant dense<0.000000e+00> : vector<1xf32>
    %219 = vector.multi_reduction <add>, %218, %cst_86 [1] : vector<1x8xf32> to vector<1xf32>
    %220 = vector.shape_cast %219 : vector<1xf32> to vector<1x1xf32>
    %221 = tpu.reciprocal %220 {approx = true} : vector<1x1xf32> -> vector<1x1xf32>
    %222 = vector.broadcast %221 : vector<1x1xf32> to vector<1x8xf32>
    %223 = arith.mulf %218, %222 : vector<1x8xf32>
    %224 = arith.truncf %223 : vector<1x8xf32> to vector<1x8xbf16>
    %cst_87 = arith.constant dense<0.000000e+00> : vector<1x16xf32>
    %225 = tpu.matmul %224, %43, %cst_87 {dimension_numbers = #tpu.dot_dimension_numbers<[1], [0], [0], [1], [0, 0, 1, 1], [], []>} : vector<1x8xbf16>, vector<8x16xbf16>, vector<1x16xf32> -> vector<1x16xf32>
    %cst_88 = arith.constant dense<0.000000e+00> : vector<1x16xf32>
    %226 = tpu.matmul %224, %40, %cst_88 {dimension_numbers = #tpu.dot_dimension_numbers<[1], [0], [0], [1], [0, 0, 1, 1], [], []>} : vector<1x8xbf16>, vector<8x16xbf16>, vector<1x16xf32> -> vector<1x16xf32>
    %227 = vector.broadcast %226 : vector<1x16xf32> to vector<8x16xf32>
    %228 = arith.addf %227, %34 : vector<8x16xf32>
    %229 = vector.broadcast %201 : vector<1x16xf32> to vector<8x16xf32>
    %230 = arith.addf %228, %229 : vector<8x16xf32>
    %231 = math.tanh %230 : vector<8x16xf32>
    %232 = arith.truncf %231 : vector<8x16xf32> to vector<8x16xbf16>
    %c2_89 = arith.constant 2 : index
    %c0_90 = arith.constant 0 : index
    %c0_91 = arith.constant 0 : index
    %233 = vector.load %arg10[%c2_89, %c0_90, %c0_91] : memref<3x1x16xbf16, #tpu.memory_space<vmem>>, vector<1x1x16xbf16>
    %234 = vector.shape_cast %233 : vector<1x1x16xbf16> to vector<1x16xbf16>
    %cst_92 = arith.constant dense<0.000000e+00> : vector<1x8xf32>
    %235 = tpu.matmul %234, %232, %cst_92 {dimension_numbers = #tpu.dot_dimension_numbers<[1], [1], [0], [0], [0, 0, 1, 0], [], []>} : vector<1x16xbf16>, vector<8x16xbf16>, vector<1x8xf32> -> vector<1x8xf32>
    %236 = arith.addf %235, %13 : vector<1x8xf32>
    %237 = arith.extf %232 : vector<8x16xbf16> to vector<8x16xf32>
    %238 = arith.extf %234 : vector<1x16xbf16> to vector<1x16xf32>
    %239 = vector.broadcast %238 : vector<1x16xf32> to vector<8x16xf32>
    %240 = arith.mulf %237, %239 : vector<8x16xf32>
    %cst_93 = arith.constant dense<0.000000e+00> : vector<8xf32>
    %241 = vector.multi_reduction <add>, %240, %cst_93 [1] : vector<8x16xf32> to vector<8xf32>
    %242 = vector.shape_cast %241 : vector<8xf32> to vector<8x1xf32>
    %243 = arith.addf %242, %19 : vector<8x1xf32>
    %244 = vector.broadcast %243 : vector<8x1xf32> to vector<8x8xf32>
    %245 = vector.broadcast %236 : vector<1x8xf32> to vector<8x8xf32>
    %246 = arith.cmpf oge, %244, %245 : vector<8x8xf32>
    %247 = arith.ori %246, %2 : vector<8x8xi1>
    %cst_94 = arith.constant 1.000000e+00 : f32
    %cst_95 = arith.constant 0.000000e+00 : f32
    %248 = vector.broadcast %cst_94 : f32 to vector<8x8xf32>
    %249 = vector.broadcast %cst_95 : f32 to vector<8x8xf32>
    %250 = arith.select %247, %248, %249 : vector<8x8xi1>, vector<8x8xf32>
    %cst_96 = arith.constant dense<0.000000e+00> : vector<8xf32>
    %251 = vector.multi_reduction <add>, %250, %cst_96 [0] : vector<8x8xf32> to vector<8xf32>
    %252 = vector.shape_cast %251 : vector<8xf32> to vector<1x8xf32>
    %253 = vector.broadcast %243 : vector<8x1xf32> to vector<8x8xf32>
    %254 = arith.mulf %253, %250 : vector<8x8xf32>
    %cst_97 = arith.constant dense<0.000000e+00> : vector<8xf32>
    %255 = vector.multi_reduction <add>, %254, %cst_97 [0] : vector<8x8xf32> to vector<8xf32>
    %256 = vector.shape_cast %255 : vector<8xf32> to vector<1x8xf32>
    %257 = arith.mulf %252, %236 : vector<1x8xf32>
    %cst_98 = arith.constant 1.000000e+00 : f32
    %258 = vector.broadcast %cst_98 : f32 to vector<1x8xf32>
    %259 = arith.addf %258, %257 : vector<1x8xf32>
    %260 = arith.cmpf ogt, %259, %256 : vector<1x8xf32>
    %cst_99 = arith.constant 0.000000e+00 : f32
    %261 = vector.broadcast %cst_99 : f32 to vector<1x8xf32>
    %262 = arith.select %260, %252, %261 : vector<1x8xi1>, vector<1x8xf32>
    %cst_100 = arith.constant dense<0xFF800000> : vector<1xf32>
    %263 = vector.multi_reduction <maximumf>, %262, %cst_100 [1] : vector<1x8xf32> to vector<1xf32>
    %264 = vector.shape_cast %263 : vector<1xf32> to vector<1x1xf32>
    %265 = vector.broadcast %264 : vector<1x1xf32> to vector<1x8xf32>
    %266 = arith.cmpf ole, %252, %265 : vector<1x8xf32>
    %cst_101 = arith.constant 0.000000e+00 : f32
    %267 = vector.broadcast %cst_101 : f32 to vector<1x8xf32>
    %268 = arith.select %266, %236, %267 : vector<1x8xi1>, vector<1x8xf32>
    %cst_102 = arith.constant dense<0.000000e+00> : vector<1xf32>
    %269 = vector.multi_reduction <add>, %268, %cst_102 [1] : vector<1x8xf32> to vector<1xf32>
    %270 = vector.shape_cast %269 : vector<1xf32> to vector<1x1xf32>
    %cst_103 = arith.constant 1.000000e+00 : f32
    %271 = vector.broadcast %cst_103 : f32 to vector<1x1xf32>
    %272 = arith.subf %270, %271 : vector<1x1xf32>
    %273 = arith.divf %272, %264 : vector<1x1xf32>
    %274 = vector.broadcast %273 : vector<1x1xf32> to vector<1x8xf32>
    %275 = arith.subf %236, %274 : vector<1x8xf32>
    %cst_104 = arith.constant 0.000000e+00 : f32
    %276 = vector.broadcast %cst_104 : f32 to vector<1x8xf32>
    %277 = arith.maximumf %275, %276 : vector<1x8xf32>
    %278 = tpu.concatenate %69, %147, %225 in 0 : vector<1x16xf32>, vector<1x16xf32>, vector<1x16xf32> -> vector<3x16xf32>
    %c0_105 = arith.constant 0 : index
    %c0_106 = arith.constant 0 : index
    %c0_107 = arith.constant 0 : index
    %279 = vector.load %arg11[%c0_105, %c0_106, %c0_107] : memref<1x3x16xf32, #tpu.memory_space<vmem>>, vector<1x3x16xf32>
    %280 = vector.shape_cast %279 : vector<1x3x16xf32> to vector<3x16xf32>
    %281 = vector.shape_cast %278 : vector<3x16xf32> to vector<1x3x16xf32>
    tpu.vector_store %arg11[%c0_105, %c0_106, %c0_107], %281 {strides = array<i32>} : memref<1x3x16xf32, #tpu.memory_space<vmem>>, vector<1x3x16xf32>,
    %282 = tpu.concatenate %121, %199, %277 in 0 : vector<1x8xf32>, vector<1x8xf32>, vector<1x8xf32> -> vector<3x8xf32>
    %c0_108 = arith.constant 0 : index
    %c0_109 = arith.constant 0 : index
    %c0_110 = arith.constant 0 : index
    %283 = vector.load %arg12[%c0_108, %c0_109, %c0_110] : memref<1x3x8xf32, #tpu.memory_space<vmem>>, vector<1x3x8xf32>
    %284 = vector.shape_cast %283 : vector<1x3x8xf32> to vector<3x8xf32>
    %285 = vector.shape_cast %282 : vector<3x8xf32> to vector<1x3x8xf32>
    tpu.vector_store %arg12[%c0_108, %c0_109, %c0_110], %285 {strides = array<i32>} : memref<1x3x8xf32, #tpu.memory_space<vmem>>, vector<1x3x8xf32>,
    %286 = vector.extract_strided_slice %26 {offsets = [0, 16], sizes = [8, 48], strides = [1, 1]} : vector<8x64xf32> to vector<8x48xf32>
    %c0_111 = arith.constant 0 : index
    %c0_112 = arith.constant 0 : index
    %c0_113 = arith.constant 0 : index
    %287 = vector.load %arg13[%c0_111, %c0_112, %c0_113] : memref<1x8x48xf32, #tpu.memory_space<vmem>>, vector<1x8x48xf32>
    %288 = vector.shape_cast %287 : vector<1x8x48xf32> to vector<8x48xf32>
    %289 = vector.shape_cast %286 : vector<8x48xf32> to vector<1x8x48xf32>
    tpu.vector_store %arg13[%c0_111, %c0_112, %c0_113], %289 {strides = array<i32>} : memref<1x8x48xf32, #tpu.memory_space<vmem>>, vector<1x8x48xf32>,
    return
  }
  func.func @transform_0(%arg0: i32) -> (i32, i32, i32) {
    %c0_i32 = arith.constant 0 : i32
    %c0_i32_0 = arith.constant 0 : i32
    %c0_i32_1 = arith.constant 0 : i32
    return %arg0, %c0_i32, %c0_i32_0 : i32, i32, i32
  }
  func.func @transform_1(%arg0: i32) -> (i32, i32, i32) {
    %c0_i32 = arith.constant 0 : i32
    %c0_i32_0 = arith.constant 0 : i32
    %c0_i32_1 = arith.constant 0 : i32
    return %arg0, %c0_i32, %c0_i32_0 : i32, i32, i32
  }
  func.func @transform_2(%arg0: i32) -> (i32, i32, i32) {
    %c0_i32 = arith.constant 0 : i32
    %c0_i32_0 = arith.constant 0 : i32
    %c0_i32_1 = arith.constant 0 : i32
    return %arg0, %c0_i32, %c0_i32_0 : i32, i32, i32
  }
  func.func @transform_3(%arg0: i32) -> (i32, i32, i32) {
    %c0_i32 = arith.constant 0 : i32
    %c0_i32_0 = arith.constant 0 : i32
    %c0_i32_1 = arith.constant 0 : i32
    return %arg0, %c0_i32, %c0_i32_0 : i32, i32, i32
  }
  func.func @transform_4(%arg0: i32) -> (i32, i32) {
    %c0_i32 = arith.constant 0 : i32
    %c0_i32_0 = arith.constant 0 : i32
    %c0_i32_1 = arith.constant 0 : i32
    return %c0_i32, %c0_i32_0 : i32, i32
  }
  func.func @transform_5(%arg0: i32) -> (i32, i32) {
    %c0_i32 = arith.constant 0 : i32
    %c0_i32_0 = arith.constant 0 : i32
    %c0_i32_1 = arith.constant 0 : i32
    return %c0_i32, %c0_i32_0 : i32, i32
  }
  func.func @transform_6(%arg0: i32) -> (i32, i32) {
    %c0_i32 = arith.constant 0 : i32
    %c0_i32_0 = arith.constant 0 : i32
    %c0_i32_1 = arith.constant 0 : i32
    return %c0_i32, %c0_i32_0 : i32, i32
  }
  func.func @transform_7(%arg0: i32) -> (i32, i32, i32) {
    %c0_i32 = arith.constant 0 : i32
    %c0_i32_0 = arith.constant 0 : i32
    %c0_i32_1 = arith.constant 0 : i32
    %c0_i32_2 = arith.constant 0 : i32
    return %c0_i32, %c0_i32_0, %c0_i32_1 : i32, i32, i32
  }
  func.func @transform_8(%arg0: i32) -> (i32, i32, i32) {
    %c0_i32 = arith.constant 0 : i32
    %c0_i32_0 = arith.constant 0 : i32
    %c0_i32_1 = arith.constant 0 : i32
    %c0_i32_2 = arith.constant 0 : i32
    return %c0_i32, %c0_i32_0, %c0_i32_1 : i32, i32, i32
  }
  func.func @transform_9(%arg0: i32) -> (i32, i32, i32) {
    %c0_i32 = arith.constant 0 : i32
    %c0_i32_0 = arith.constant 0 : i32
    %c0_i32_1 = arith.constant 0 : i32
    %c0_i32_2 = arith.constant 0 : i32
    return %c0_i32, %c0_i32_0, %c0_i32_1 : i32, i32, i32
  }
  func.func @transform_10(%arg0: i32) -> (i32, i32, i32) {
    %c0_i32 = arith.constant 0 : i32
    %c0_i32_0 = arith.constant 0 : i32
    %c0_i32_1 = arith.constant 0 : i32
    return %arg0, %c0_i32, %c0_i32_0 : i32, i32, i32
  }
  func.func @transform_11(%arg0: i32) -> (i32, i32, i32) {
    %c0_i32 = arith.constant 0 : i32
    %c0_i32_0 = arith.constant 0 : i32
    %c0_i32_1 = arith.constant 0 : i32
    return %arg0, %c0_i32, %c0_i32_0 : i32, i32, i32
  }
  func.func @transform_12(%arg0: i32) -> (i32, i32, i32) {
    %c0_i32 = arith.constant 0 : i32
    %c0_i32_0 = arith.constant 0 : i32
    %c0_i32_1 = arith.constant 0 : i32
    return %arg0, %c0_i32, %c0_i32_0 : i32, i32, i32
  }
}

</mosaic_0001>

<bundles_post_ra>
// kernel: tracenet_model.1
= control target key start
LH: loop header
LB: loop body
LE: loop exit
PB: predicated region body
PF: predicated region fallthrough
CT: control target
= control target key end

     0   :  { %s2141_s21 = smov 0   ;;  %s2455_s0 = inlined_call_operand.vmem [shape: bf16[2,8,32], index: 0, kind: input, shape index: {}]   ;;  %s2456_s1 = inlined_call_operand.vmem [shape: f32[2,1,8], index: 1, kind: input, shape index: {}]   ;;  %s2457_s2 = inlined_call_operand.vmem [shape: f32[2,8,1], index: 2, kind: input, shape index: {}]   ;;  %s2458_s3 = inlined_call_operand.vmem [shape: f32[2,1,8], index: 3, kind: input, shape index: {}]   ;;  %s2459_s4 = inlined_call_operand.vmem [shape: bf16[32,64], index: 4, kind: input, shape index: {}]   ;;  %s2460_s5 = inlined_call_operand.vmem [shape: f32[1,64], index: 5, kind: input, shape index: {}]   ;;  %s2461_s6 = inlined_call_operand.vmem [shape: bf16[64,144], index: 6, kind: input, shape index: {}]   ;;  %s2462_s7 = inlined_call_operand.vmem [shape: f32[3,1,16], index: 7, kind: input, shape index: {}]   ;;  %s2463_s8 = inlined_call_operand.vmem [shape: bf16[3,1,16], index: 8, kind: input, shape index: {}]   ;;  %s2464_s9 = inlined_call_operand.vmem [shape: bf16[3,1,16], index: 9, kind: input, shape index: {}]   ;;  %s2465_s10 = inlined_call_operand.vmem [shape: f32[2,3,16], index: 10, kind: output, shape index: {0}]   ;;  %s2466_s11 = inlined_call_operand.vmem [shape: f32[2,3,8], index: 11, kind: output, shape index: {1}]   ;;  %s2467_s12 = inlined_call_operand.vmem [shape: f32[2,8,48], index: 12, kind: output, shape index: {2}]  }
   0x1 LB: > { %s1812_s22 = sadd.s32 4294967295, %s2064_s21   ;;  %p1816_p0 = scmp.ge.s32.totalorder %s2064_s21, 1  ;;  %s2064_s21 = sphi %s2141_s21, %s23_s21  }
   0x2   : > { %p391_p1 = scmp.lt.s32.totalorder %s2064_s21, 3 }
   0x4   : > { %p392_p2 = pnand %p1816_p0, %p391_p1 }
   0x5   : > { %v2014_v0 = vld [vmem:[%s2459_s4] sm:$0xff] (!%p392_p2)   ;;  %v2066_v1 = vmov (!%p392_p2), 0.0   ;;  %v2015_v2 = vld [vmem:[%s2459_s4 + $0x8] sm:$0xff] (!%p392_p2)   ;;  %vm2067_vm0 = vmmov (!%p392_p2), 0   ;;  %p449_p3 = scmp.lt.s32.totalorder (!%p392_p2), %s1812_s22, 1  ;;  %vm520_vm1 = vcmask (!%p392_p2), 261120   ;;  %v476_v31 = vlaneseq (!%p392_p2) }
   0x6   : > { %395 = sbr.rel (%p392_p2) target bundleno = 5361 (0x14f1), region = 60  ;;  %1897 = vmatprep.subr.bf16.mxu0 (!%p392_p2), %v2066_v1  ;;  %1901 = vmatprep.mubr.msk.bf16.mxu0 (!%p392_p2), %vm2067_vm0, %v2066_v1  ;;  %v2016_v3 = vld [vmem:[%s2461_s6 + $0x4] ss:$8 sps:$4 sm:$0xff] (!%p392_p2)   ;;  %v2018_v4 = vld [vmem:[%s2461_s6] ss:$8 sps:$4 sm:$0xff] (!%p392_p2)   ;;  %v2068_v12 = vmov (!%p392_p2), 0  }
   0x7   : > { %1898 = vmatpush3.bf16.msra.mxu0 (!%p392_p2), %v2014_v0  ;;  %610 = vmatprep.subr.bf16.mxu1 (!%p392_p2), %v2016_v3  ;;  %v2019_v5 = vld [vmem:[%s2461_s6 + $0x14] ss:$8 sps:$4 sm:$0xff] (!%p392_p2)   ;;  %v2021_v6 = vld [vmem:[%s2461_s6 + $0x10] ss:$8 sps:$4 sm:$0xff] (!%p392_p2)   ;;  %v2022_v7 = vld [vmem:[%s2461_s6 + $0x24] ss:$8 sps:$4 sm:$0xff] (!%p392_p2)  }
   0x8   : > { %1899 = vmatprep.subr.bf16.mxu0 (!%p392_p2), %v2066_v1  ;;  %611 = vmatpush1.bf16.msra.mxu1 (!%p392_p2), %v2018_v4  ;;  %v2024_v9 = vld [vmem:[%s2461_s6 + $0x20] ss:$8 sps:$4 sm:$0xff] (!%p392_p2)   ;;  %v2025_v10 = vld [vmem:[%s2461_s6 + $0x34] ss:$8 sps:$4 sm:$0xff] (!%p392_p2)   ;;  %v2027_v11 = vld [vmem:[%s2461_s6 + $0x30] ss:$8 sps:$4 sm:$0xff] (!%p392_p2)  }
   0x9   : > { %612 = vmatprep.subr.bf16.mxu1 (!%p392_p2), %v2019_v5  ;;  %642 = vmatprep.mubr.bf16.mxu1 (!%p392_p2), %v2068_v12  ;;  %v1822_v13 = vld [vmem:[%s2460_s5] ss:$0 sm:$0xff] (!%p392_p2)  ;;  %vm606_vm2 = vcmask (!%p392_p2), 523264   ;;  %vm662_vm3 = vcmask (!%p392_p2), 1043456   ;;  %s2069_s15 = smov (!%p392_p2), 32   ;;  %vm658_vm4 = vcmask (!%p392_p2), 64512  }
   0xa   : > { %2013 = vset.pattern.permute.xlu0 (!%p392_p2), %v2068_v12  ;;  %v2230_v32 = vshrl.u32 (!%p392_p2), %v476_v31, 7  ;;  %v1836_v37 = vld [vmem:[%s2462_s7] ss:$0 sm:$0xff] (!%p392_p2)  ;;  %vm721_vm5 = vcmask (!%p392_p2), 130048   ;;  %vm768_vm6 = vcmask (!%p392_p2), 57344   ;;  %s2070_s29 = smov (!%p392_p2), 112  }
   0xb   : > { %1900 = vmatpush3.bf16.msra.mxu0 (!%p392_p2), %v2015_v2  ;;  %v719_v45 = vld [vmem:[%s2463_s8] sm:$0x1] (!%p392_p2)  ;;  %s2072_s20 = smov (!%p392_p2), 16   ;;  %s2073_s27 = smov (!%p392_p2), 80   ;;  %vm1645_vm12 = vcmask (!%p392_p2), 1040384  }
   0xc   : > { %1905 = vmatprep.subr.bf16.mxu0 (!%p392_p2), %v2066_v1  ;;  %613 = vmatpush1.bf16.msra.mxu1 (!%p392_p2), %v2021_v6  ;;  %v2233_v33 = vsub.s32 (!%p392_p2), 0, %v2230_v32  ;;  %s2074_s13 = smov (!%p392_p2), 64  }
   0xd   : > { %s2469_s22 = smov (!%p449_p3, %s1812_s22), 1  ;;  %614 = vmatprep.subr.bf16.mxu1 %v2022_v7 }
   0xe   : > { %s2174_s17 = sshll.u32 %s2469_s22, 2  ;;  %s462_s19 = scalar_lea.vmem %s2458_s3, %s2469_s22 }
   0xf   : > { %s452_s24 = scalar_lea.vmem %s2455_s0, %s2174_s17  ;;  %v501_v27 = vld [vmem:[%s462_s19] sm:$0x1]  ;;  %s455_s28 = scalar_lea.vmem %s2456_s1, %s2469_s22 }
  0x10   : > { %v494_v8 = vld [vmem:[%s452_s24] sm:$0xf]  ;;  %615 = vmatpush1.bf16.msra.mxu1 %v2024_v9  ;;  %v654_v30 = vpack.c.bf16 %v501_v27, %v501_v27  ;;  %s1818_s14 = sshll.u32 %s2469_s22, 3  ;;  %s2071_s19 = smov 96  }
  0x11   : > { %1902 = vmatmul.mubr.msk.bf16.vlgmr.msra.gmra.mrb[0].mxu0 %vm520_vm1, %v494_v8  ;;  %616 = vmatprep.subr.bf16.mxu1 %v2025_v10  ;;  %v495_v46 = vld [vmem:[%s455_s28] sm:$0x1]  ;;  %s459_s18 = scalar_lea.vmem %s2457_s2, %s1818_s14  ;;  %s466_s25 = scalar_lea.vmem %s2465_s10, %s2174_s17 }
  0x12   : > { %1907 = vmatprep.mubr.msk.bf16.mxu0 %vm2067_vm0, %v2066_v1  ;;  %v496_v47 = vsub.f32 1.0, %v495_v46  ;;  %v498_v27 = vld [vmem:[%s459_s18] sm:$0xff] }
  0x14   : > { %617 = vmatpush1.bf16.msra.mxu1 %v2027_v11  ;;  %v2253_v48 = vmul.f32 -10000.0, %v496_v47 }
  0x15   : > { %1917 = vmatprep.subr.bf16.mxu1 %v2066_v1 }
  0xe4   : > { %v558_v14 = vpop.f32.mrb[0].mxu0 }
  0xe5   : > { %v559_v15 = vadd.f32 %v1822_v13, %v558_v14  ;;  %v1903_v16 = vpop.f32.mrb[1].mxu0  ;;  %v878_v13 = vld [vmem:[%s2464_s9] sm:$0x1] }
  0xe6   : > { %v561_v17 = vpop.f32.mrb[2].mxu0  ;;  %v926_v14 = vunpack.c.l.bf16 %v878_v13 }
  0xe7   : > { %v2199_v18 = vmax.f32 %v559_v15, 0.0  ;;  %v1904_v19 = vpop.f32.mrb[3].mxu0 }
  0xe8   : > { %v930_v17 = vrot.slane %v926_v14, %v2233_v33 }
  0xe9   : > { %v2203_v20 = vpack.c.bf16 %v2199_v18, %v2199_v18 }
  0xeb   : > { %1834 = vmatmul.mubr.msk.bf16.vlgmr.msra.gmra.mrb[0].mxu1 %vm606_vm2, %v2203_v20  ;;  %v784_v21 = vsel %vm662_vm3, %v2203_v20, 0  ;;  %vm1647_vm2 = vcmask 1041408  }
  0xec   : > { %1918 = vmatpush3.bf16.msra.mxu1 %v784_v21  ;;  %1919 = vmatprep.mubr.msk.bf16.mxu1 %vm2067_vm0, %v2066_v1 }
  0xed   : > { %1929 = vmatprep.subr.bf16.mxu1 %v2066_v1 }
 0x1be   : > { %v2211_v22 = vpop.f32.mrb[0].mxu1 }
 0x1bf   : > { %v2213_v23 = vpop.f32.mrb[1].mxu1  ;;  %v2217_v24 = vpack.c.bf16 %v2211_v22, %v2211_v22 }
 0x1c0   : > { %v648_v25 = vpop.f32.mrb[2].mxu1 }
 0x1c1   : > { %656 = vrot.lane.b32.xlu0 %v2217_v24, %s2069_s15  ;;  %v649_v26 = vpop.f32.mrb[3].mxu1 }
 0x233   : > { %v657_v28 = vpop.permute.xlu0 %656 }
 0x234   : > { %v664_v29 = vsel %vm662_vm3, %v657_v28, 0  ;;  %v499_v28 = vsub.f32 1.0, %v498_v27 }
 0x235   : > { %1906 = vmatpush3.bf16.msra.mxu0 %v664_v29 }
 0x236   : > { %1911 = vmatprep.subr.bf16.mxu0 %v2066_v1 }
 0x238   : > { %1908 = vmatmul.mubr.msk.bf16.vlgmr.msra.gmra.mrb[4].mxu0 %vm658_vm4, %v654_v30 }
 0x239   : > { %1913 = vmatprep.mubr.msk.bf16.mxu0 %vm2067_vm0, %v2066_v1 }
 0x30b   : > { %v700_v34 = vpop.f32.mrb[4].mxu0 }
 0x30c   : > { %v709_v35 = vrot.slane %v700_v34, %v2233_v33  ;;  %v1909_v36 = vpop.f32.mrb[5].mxu0 }
 0x30d   : > { %v703_v38 = vpop.f32.mrb[6].mxu0 }
 0x30e   : > { %v710_v39 = vadd.f32 %v709_v35, %v2211_v22  ;;  %v1910_v40 = vpop.f32.mrb[7].mxu0 }
 0x30f   : > { %v2292_v40 = vand.u32 127, %v476_v31 }
 0x310   : > { %v717_v41 = vadd.f32 %v1836_v37, %v710_v39 }
 0x311   : > { %vm480_vm7 = vcmp.eq.s32.totalorder %v2230_v32, %v2292_v40 }
 0x312   : > { %2028 = vtanh.f32 %v717_v41 }
 0x31c   : > { %v2029_v42 = vpop.eup %2028 }
 0x31d   : > { %v720_v43 = vpack.c.bf16 %v2029_v42, %v2029_v42 }
 0x31f   : > { %v726_v44 = vsel %vm721_vm5, %v720_v43, 0 }
 0x320   : > { %1912 = vmatpush3.bf16.xpose.msra.mxu0 %v726_v44 }
 0x321   : > { %1923 = vmatprep.subr.bf16.mxu0 %v2066_v1 }
 0x327   : > { %1914 = vmatmul.mubr.msk.bf16.vlgmr.msra.gmra.mrb[8].mxu0 %vm721_vm5, %v719_v45 }
 0x328   : > { %1924 = vmatpush3.bf16.msra.mxu0 %v664_v29  ;;  %1925 = vmatprep.mubr.msk.bf16.mxu0 %vm2067_vm0, %v2066_v1  ;;  %v2285_v29 = vmul.f32 -10000.0, %v499_v28 }
 0x329   : > { %1935 = vmatprep.subr.bf16.mxu0 %v2066_v1 }
 0x3fa   : > { %v762_v49 = vpop.f32.mrb[8].mxu0 }
 0x3fb   : > { %v763_v50 = vadd.f32 %v762_v49, %v2253_v48  ;;  %v1915_v51 = vpop.f32.mrb[9].mxu0 }
 0x3fc   : > { %v765_v52 = vpop.f32.mrb[10].mxu0 }
 0x3fd   : > { %v1916_v53 = vpop.f32.mrb[11].mxu0  ;;  %v769_v54 = vsel %vm768_vm6, %v763_v50, -inf }
 0x3fe   : > { %770 = vmax.xlane.f32.xlu0 %v769_v54 }
 0x48b   : > { %v771_v55 = vpop.xlane.xlu0 %770 }
 0x48c   : > { %v772_v56 = vsub.f32 %v763_v50, %v771_v55 }
 0x48e   : > { %v773_v57 = vmul.f32 1.442695, %v772_v56 }
 0x490   : > { %2030 = vpow2.f32 %v773_v57 }
 0x49a   : > { %v2031_v58 = vpop.eup %2030 }
 0x49b   : > { %v775_v59 = vsel %vm768_vm6, %v2031_v58, 0.0 }
 0x49c   : > { %776 = vadd.xlane.f32.xlu1 %v775_v59 }
 0x4ad   : > { %871 = vrot.lane.b32.xlu1 %v2211_v22, %s2070_s29 }
 0x529   : > { %v777_v60 = vpop.xlane.xlu1 %776 }
 0x52a   : > { %2032 = vrcp.f32 %v777_v60 }
 0x52d   : > { %v872_v0 = vpop.permute.xlu1 %871 }
 0x534   : > { %v2033_v61 = vpop.eup %2032 }
 0x535   : > { %v779_v62 = vmul.f32 %v2033_v61, %v2031_v58 }
 0x537   : > { %v780_v63 = vpack.c.bf16 %v779_v62, %v779_v62 }
 0x539   : > { %1920 = vmatmul.mubr.msk.bf16.vlgmr.msra.gmra.mrb[4].mxu1 %vm658_vm4, %v780_v63  ;;  %1926 = vmatmul.mubr.msk.bf16.vlgmr.msra.gmra.mrb[12].mxu0 %vm658_vm4, %v780_v63 }
 0x53a   : > { %1931 = vmatprep.mubr.msk.bf16.mxu1 %vm2067_vm0, %v2066_v1  ;;  %1937 = vmatprep.mubr.msk.bf16.mxu0 %vm2067_vm0, %v2066_v1 }
 0x60c   : > { %v2266_v2 = vpop.f32.mrb[4].mxu1  ;;  %v860_v3 = vpop.f32.mrb[12].mxu0 }
 0x60d   : > { %v869_v4 = vrot.slane %v860_v3, %v2233_v33  ;;  %v1921_v5 = vpop.f32.mrb[5].mxu1  ;;  %v1927_v6 = vpop.f32.mrb[13].mxu0 }
 0x60e   : > { %v823_v7 = vpop.f32.mrb[6].mxu1  ;;  %v863_v8 = vpop.f32.mrb[14].mxu0 }
 0x60f   : > { %v874_v9 = vadd.f32 %v872_v0, %v869_v4  ;;  %v1922_v10 = vpop.f32.mrb[7].mxu1  ;;  %v1928_v11 = vpop.f32.mrb[15].mxu0 }
 0x611   : > { %v875_v12 = vadd.f32 %v1836_v37, %v874_v9 }
 0x613   : > { %2034 = vtanh.f32 %v875_v12 }
 0x61d   : > { %v2035_v15 = vpop.eup %2034 }
 0x61e   : > { %v877_v16 = vpack.c.bf16 %v2035_v15, %v2035_v15 }
 0x620   : > { %v883_v19 = vsel %vm721_vm5, %v877_v16, 0  ;;  %v925_v21 = vunpack.c.l.bf16 %v877_v16  ;;  %v2319_v16 = vld [vmem:[%s2462_s7 + $0x1] ss:$0 sm:$0xff] }
 0x621   : > { %1930 = vmatpush3.bf16.xpose.msra.mxu1 %v883_v19 }
 0x622   : > { %v931_v25 = vmul.f32 %v930_v17, %v925_v21  ;;  %1941 = vmatprep.subr.bf16.mxu1 %v2066_v1 }
 0x624   : > { %v932_v26 = vsel %vm721_vm5, %v931_v25, 0.0 }
 0x625   : > { %933 = vadd.xlane.f32.xlu1 %v932_v26 }
 0x628   : > { %1932 = vmatmul.mubr.msk.bf16.vlgmr.msra.gmra.mrb[8].mxu1 %vm721_vm5, %v878_v13 }
 0x629   : > { %1943 = vmatprep.mubr.msk.bf16.mxu1 %vm2067_vm0, %v2066_v1 }
 0x6b2   : > { %v934_v30 = vpop.xlane.xlu1 %933 }
 0x6b3   : > { %v935_v34 = vadd.f32 %v934_v30, %v2285_v29  ;;  %v1845_v30 = vld [vmem:[%s2463_s8 + $0x1] sm:$0x1] }
 0x6b5   : > { %938 = vperm.xlu0 %2013, %v935_v34  }
 0x6b9   : > { %1035 = vrot.lane.b32.xlu0 %v2211_v22, %s2071_s19 }
 0x6fb   : > { %v919_v35 = vpop.f32.mrb[8].mxu1 }
 0x6fc   : > { %v1933_v36 = vpop.f32.mrb[9].mxu1  ;;  %v920_v39 = vadd.f32 %v919_v35, %v2253_v48 }
 0x6fd   : > { %v922_v37 = vpop.f32.mrb[10].mxu1 }
 0x6fe   : > { %v1934_v38 = vpop.f32.mrb[11].mxu1  ;;  %v944_v41 = vrot.slane %v920_v39, %v2233_v33 }
 0x734   : > { %v939_v42 = vpop.permute.xlu0 %938 }
 0x735   : > { %vm945_vm8 = vcmp.ge.f32.partialorder %v939_v42, %v944_v41 }
 0x736   : > { %vm946_vm9 = vmor %vm945_vm8, %vm480_vm7 }
 0x737   : > { %v947_v43 = vsel %vm946_vm9, 1.0, %v2066_v1 }
 0x738   : > { %v948_v44 = vsel %vm658_vm4, %v947_v43, 0.0  ;;  %v955_v45 = vmul.f32 %v947_v43, %v939_v42  ;;  %v1036_v15 = vpop.permute.xlu0 %1035 }
 0x739   : > { %v949_v46 = vrot.slane %v948_v44, 4 }
 0x73a   : > { %v956_v31 = vsel %vm658_vm4, %v955_v45, 0.0 }
 0x73b   : > { %v950_v47 = vadd.f32 %v949_v46, %v948_v44  ;;  %v957_v49 = vrot.slane %v956_v31, 4 }
 0x73d   : > { %v951_v50 = vrot.slane %v950_v47, 2  ;;  %v958_v51 = vadd.f32 %v957_v49, %v956_v31 }
 0x73f   : > { %v952_v52 = vadd.f32 %v951_v50, %v950_v47  ;;  %v959_v53 = vrot.slane %v958_v51, 2  ;;  %v652_v50 = vpack.c.bf16 %v2213_v23, %v2213_v23 }
 0x741   : > { %v953_v54 = vrot.slane %v952_v52, 1  ;;  %v960_v55 = vadd.f32 %v959_v53, %v958_v51  ;;  %v2342_v53 = vsel %vm662_vm3, %v652_v50, 0 }
 0x743   : > { %v954_v56 = vadd.f32 %v953_v54, %v952_v52  ;;  %v961_v57 = vrot.slane %v960_v55, 1 }
 0x745   : > { %v963_v58 = vmul.f32 %v954_v56, %v920_v39  ;;  %v962_v59 = vadd.f32 %v961_v57, %v960_v55 }
 0x747   : > { %v964_v60 = vadd.f32 1.0, %v963_v58 }
 0x749   : > { %vm965_vm10 = vcmp.gt.f32.partialorder %v964_v60, %v962_v59 }
 0x74a   : > { %v966_v61 = vsel %vm965_vm10, %v954_v56, 0.0 }
 0x74b   : > { %v967_v62 = vsel %vm768_vm6, %v966_v61, -inf }
 0x74c   : > { %968 = vmax.xlane.f32.xlu1 %v967_v62 }
 0x7d9   : > { %v969_v63 = vpop.xlane.xlu1 %968 }
 0x7da   : > { %vm970_vm11 = vcmp.le.f32.partialorder %v954_v56, %v969_v63  ;;  %2036 = vrcp.f32 %v969_v63 }
 0x7db   : > { %v971_v0 = vsel %vm970_vm11, %v920_v39, 0.0 }
 0x7dc   : > { %v972_v3 = vsel %vm768_vm6, %v971_v0, 0.0 }
 0x7dd   : > { %973 = vadd.xlane.f32.xlu1 %v972_v3 }
 0x7e4   : > { %v2037_v6 = vpop.eup %2036 }
 0x7ee   : > { %983 = vrot.lane.b32.xlu1 %v2217_v24, %s2072_s20  ;;  %s2075_s20 = smov 48  }
 0x86a   : > { %v974_v4 = vpop.xlane.xlu1 %973 }
 0x86b   : > { %v1841_v5 = vadd.f32 -1.0, %v974_v4 }
 0x86d   : > { %v977_v7 = vmul.f32 %v2037_v6, %v1841_v5  ;;  %v1849_v5 = vld [vmem:[%s2464_s9 + $0x1] sm:$0x1] }
 0x86e   : > { %v984_v8 = vpop.permute.xlu1 %983  ;;  %v1257_v6 = vunpack.c.l.bf16 %v1849_v5 }
 0x86f   : > { %v978_v9 = vsub.f32 %v920_v39, %v977_v7  ;;  %v989_v10 = vsel %vm662_vm3, %v984_v8, 0 }
 0x870   : > { %1936 = vmatpush3.bf16.msra.mxu0 %v989_v10 }
 0x871   : > { %v2307_v11 = vmax.f32 %v978_v9, 0.0  ;;  %1947 = vmatprep.subr.bf16.mxu0 %v2066_v1  ;;  %v1261_v9 = vrot.slane %v1257_v6, %v2233_v33  ;;  %v1854_v6 = vld [vmem:[%s2462_s7 + $0x2] ss:$0 sm:$0xff] }
 0x873   : > { %v982_v12 = vpack.c.bf16 %v2307_v11, %v2307_v11 }
 0x875   : > { %1938 = vmatmul.mubr.msk.bf16.vlgmr.msra.gmra.mrb[16].mxu0 %vm658_vm4, %v982_v12 }
 0x876   : > { %1949 = vmatprep.mubr.msk.bf16.mxu0 %vm2067_vm0, %v2066_v1 }
 0x948   : > { %v1025_v24 = vpop.f32.mrb[16].mxu0 }
 0x949   : > { %v1034_v13 = vrot.slane %v1025_v24, %v2233_v33  ;;  %v1939_v14 = vpop.f32.mrb[17].mxu0 }
 0x94a   : > { %v1028_v17 = vpop.f32.mrb[18].mxu0 }
 0x94b   : > { %v1038_v19 = vadd.f32 %v1036_v15, %v1034_v13  ;;  %v1940_v21 = vpop.f32.mrb[19].mxu0 }
 0x94d   : > { %v1045_v25 = vadd.f32 %v2319_v16, %v1038_v19 }
 0x94f   : > { %2038 = vtanh.f32 %v1045_v25 }
 0x959   : > { %v2039_v26 = vpop.eup %2038 }
 0x95a   : > { %v1049_v27 = vpack.c.bf16 %v2039_v26, %v2039_v26 }
 0x95c   : > { %v1054_v28 = vsel %vm721_vm5, %v1049_v27, 0 }
 0x95d   : > { %1942 = vmatpush3.bf16.xpose.msra.mxu1 %v1054_v28 }
 0x95e   : > { %1953 = vmatprep.subr.bf16.mxu1 %v2066_v1 }
 0x964   : > { %1944 = vmatmul.mubr.msk.bf16.vlgmr.msra.gmra.mrb[12].mxu1 %vm721_vm5, %v1845_v30 }
 0x965   : > { %1954 = vmatpush3.bf16.msra.mxu1 %v989_v10  ;;  %1955 = vmatprep.mubr.msk.bf16.mxu1 %vm2067_vm0, %v2066_v1 }
 0x966   : > { %1965 = vmatprep.subr.bf16.mxu1 %v2066_v1 }
 0xa37   : > { %v1090_v34 = vpop.f32.mrb[12].mxu1 }
 0xa38   : > { %v1091_v35 = vadd.f32 %v1090_v34, %v2253_v48  ;;  %v1945_v36 = vpop.f32.mrb[13].mxu1 }
 0xa39   : > { %v1093_v37 = vpop.f32.mrb[14].mxu1 }
 0xa3a   : > { %v1096_v38 = vsel %vm768_vm6, %v1091_v35, -inf  ;;  %v1946_v39 = vpop.f32.mrb[15].mxu1 }
 0xa3b   : > { %1097 = vmax.xlane.f32.xlu1 %v1096_v38 }
 0xa4c   : > { %1109 = vrot.lane.b32.xlu1 %v2203_v20, %s2070_s29 }
 0xac8   : > { %v1098_v41 = vpop.xlane.xlu1 %1097 }
 0xac9   : > { %v1099_v42 = vsub.f32 %v1091_v35, %v1098_v41 }
 0xacb   : > { %v1100_v43 = vmul.f32 1.442695, %v1099_v42 }
 0xacc   : > { %v1110_v44 = vpop.permute.xlu1 %1109 }
 0xacd   : > { %2040 = vpow2.f32 %v1100_v43  ;;  %v1115_v45 = vsel %vm662_vm3, %v1110_v44, 0 }
 0xace   : > { %1948 = vmatpush3.bf16.msra.mxu0 %v1115_v45 }
 0xacf   : > { %1959 = vmatprep.subr.bf16.mxu0 %v2066_v1 }
 0xad7   : > { %v2041_v46 = vpop.eup %2040 }
 0xad8   : > { %v1102_v31 = vsel %vm768_vm6, %v2041_v46, 0.0 }
 0xad9   : > { %1103 = vadd.xlane.f32.xlu0 %v1102_v31 }
 0xaef   : > { %1201 = vrot.lane.b32.xlu0 %v2211_v22, %s2073_s27 }
 0xb66   : > { %v1104_v47 = vpop.xlane.xlu0 %1103 }
 0xb67   : > { %2042 = vrcp.f32 %v1104_v47 }
 0xb6a   : > { %v1202_v23 = vpop.permute.xlu0 %1201 }
 0xb71   : > { %v2043_v49 = vpop.eup %2042 }
 0xb72   : > { %v1106_v51 = vmul.f32 %v2043_v49, %v2041_v46 }
 0xb74   : > { %v1107_v52 = vpack.c.bf16 %v1106_v51, %v1106_v51 }
 0xb76   : > { %1950 = vmatmul.mubr.msk.bf16.vlgmr.msra.gmra.mrb[20].mxu0 %vm658_vm4, %v1107_v52  ;;  %1956 = vmatmul.mubr.msk.bf16.vlgmr.msra.gmra.mrb[16].mxu1 %vm658_vm4, %v1107_v52 }
 0xb77   : > { %1966 = vmatpush3.bf16.msra.mxu1 %v2342_v53  ;;  %1961 = vmatprep.mubr.msk.bf16.mxu0 %vm2067_vm0, %v2066_v1 }
 0xb78   : > { %1967 = vmatprep.mubr.msk.bf16.mxu1 %vm2067_vm0, %v2066_v1  ;;  %1977 = vmatprep.subr.bf16.mxu1 %v2066_v1 }
 0xc49   : > { %v1151_v54 = vpop.f32.mrb[20].mxu0  ;;  %v1191_v55 = vpop.f32.mrb[16].mxu1 }
 0xc4a   : > { %v1640_v56 = vrot.slane %v1151_v54, 7  ;;  %v1200_v57 = vrot.slane %v1191_v55, %v2233_v33  ;;  %v1951_v58 = vpop.f32.mrb[21].mxu0  ;;  %v1957_v59 = vpop.f32.mrb[17].mxu1 }
 0xc4b   : > { %v1154_v60 = vpop.f32.mrb[22].mxu0  ;;  %v1194_v61 = vpop.f32.mrb[18].mxu1 }
 0xc4c   : > { %v2355_v62 = vsel %vm1645_vm12, %v2266_v2, %v1640_v56  ;;  %v1204_v63 = vadd.f32 %v1202_v23, %v1200_v57  ;;  %v1952_v0 = vpop.f32.mrb[23].mxu0  ;;  %v1958_v3 = vpop.f32.mrb[19].mxu1 }
 0xc4e   : > { %v1205_v4 = vadd.f32 %v2319_v16, %v1204_v63 }
 0xc50   : > { %2044 = vtanh.f32 %v1205_v4 }
 0xc5a   : > { %v2045_v7 = vpop.eup %2044 }
 0xc5b   : > { %v1207_v8 = vpack.c.bf16 %v2045_v7, %v2045_v7 }
 0xc5d   : > { %v1214_v10 = vsel %vm721_vm5, %v1207_v8, 0  ;;  %v1256_v12 = vunpack.c.l.bf16 %v1207_v8 }
 0xc5e   : > { %1960 = vmatpush3.bf16.xpose.msra.mxu0 %v1214_v10 }
 0xc5f   : > { %v1262_v2 = vmul.f32 %v1261_v9, %v1256_v12  ;;  %1971 = vmatprep.subr.bf16.mxu0 %v2066_v1 }
 0xc61   : > { %v1263_v24 = vsel %vm721_vm5, %v1262_v2, 0.0 }
 0xc62   : > { %1264 = vadd.xlane.f32.xlu1 %v1263_v24 }
 0xc65   : > { %1962 = vmatmul.mubr.msk.bf16.vlgmr.msra.gmra.mrb[24].mxu0 %vm721_vm5, %v1849_v5 }
 0xc66   : > { %1973 = vmatprep.mubr.msk.bf16.mxu0 %vm2067_vm0, %v2066_v1 }
 0xc73   : > { %1364 = vrot.lane.b32.xlu1 %v2211_v22, %s2074_s13  ;;  %s474_s13 = scalar_lea.vmem %s2467_s12, %s1818_s14 }
 0xc77   : > { %1437 = vrot.lane.b32.xlu1 %v2203_v20, %s2071_s19 }
 0xcef   : > { %v1265_v13 = vpop.xlane.xlu1 %1264 }
 0xcf0   : > { %v1266_v14 = vadd.f32 %v1265_v13, %v2285_v29  ;;  %v1855_v13 = vld [vmem:[%s2463_s8 + $0x2] sm:$0x1] }
 0xcf2   : > { %1269 = vperm.xlu0 %2013, %v1266_v14  }
 0xcf3   : > { %v1365_v57 = vpop.permute.xlu1 %1364 }
 0xcf7   : > { %v1438_v61 = vpop.permute.xlu1 %1437 }
 0xcf8   : > { %v1443_v0 = vsel %vm662_vm3, %v1438_v61, 0  ;;  %vm1649_vm3 = vcmask 124928  }
 0xd38   : > { %v1250_v15 = vpop.f32.mrb[24].mxu0 }
 0xd39   : > { %v1963_v16 = vpop.f32.mrb[25].mxu0  ;;  %v1251_v21 = vadd.f32 %v1250_v15, %v2253_v48 }
 0xd3a   : > { %v1253_v17 = vpop.f32.mrb[26].mxu0 }
 0xd3b   : > { %v1964_v19 = vpop.f32.mrb[27].mxu0  ;;  %v1275_v25 = vrot.slane %v1251_v21, %v2233_v33 }
 0xd71   : > { %v1270_v26 = vpop.permute.xlu0 %1269 }
 0xd72   : > { %vm1276_vm13 = vcmp.ge.f32.partialorder %v1270_v26, %v1275_v25 }
 0xd73   : > { %vm1277_vm14 = vmor %vm1276_vm13, %vm480_vm7 }
 0xd74   : > { %v1278_v20 = vsel %vm1277_vm14, 1.0, %v2066_v1 }
 0xd75   : > { %v1279_v27 = vsel %vm658_vm4, %v1278_v20, 0.0  ;;  %v1286_v28 = vmul.f32 %v1278_v20, %v1270_v26 }
 0xd76   : > { %v1280_v30 = vrot.slane %v1279_v27, 4 }
 0xd77   : > { %v1287_v34 = vsel %vm658_vm4, %v1286_v28, 0.0 }
 0xd78   : > { %v1281_v35 = vadd.f32 %v1280_v30, %v1279_v27  ;;  %v1288_v36 = vrot.slane %v1287_v34, 4 }
 0xd7a   : > { %v1282_v37 = vrot.slane %v1281_v35, 2  ;;  %v1289_v38 = vadd.f32 %v1288_v36, %v1287_v34 }
 0xd7c   : > { %v1283_v39 = vadd.f32 %v1282_v37, %v1281_v35  ;;  %v1290_v41 = vrot.slane %v1289_v38, 2 }
 0xd7e   : > { %v1284_v42 = vrot.slane %v1283_v39, 1  ;;  %v1291_v43 = vadd.f32 %v1290_v41, %v1289_v38 }
 0xd80   : > { %v1285_v44 = vadd.f32 %v1284_v42, %v1283_v39  ;;  %v1292_v45 = vrot.slane %v1291_v43, 1 }
 0xd82   : > { %v1294_v46 = vmul.f32 %v1285_v44, %v1251_v21  ;;  %v1293_v31 = vadd.f32 %v1292_v45, %v1291_v43 }
 0xd84   : > { %v1295_v47 = vadd.f32 1.0, %v1294_v46 }
 0xd86   : > { %vm1296_vm15 = vcmp.gt.f32.partialorder %v1295_v47, %v1293_v31 }
 0xd87   : > { %v1297_v49 = vsel %vm1296_vm15, %v1285_v44, 0.0 }
 0xd88   : > { %v1298_v50 = vsel %vm768_vm6, %v1297_v49, -inf }
 0xd89   : > { %1299 = vmax.xlane.f32.xlu0 %v1298_v50  ;;  %v1859_v50 = vld [vmem:[%s2464_s9 + $0x2] sm:$0x1] }
 0xe16   : > { %v1300_v51 = vpop.xlane.xlu0 %1299 }
 0xe17   : > { %vm1301_vm1 = vcmp.le.f32.partialorder %v1285_v44, %v1300_v51  ;;  %2046 = vrcp.f32 %v1300_v51  ;;  %v1585_v51 = vunpack.c.l.bf16 %v1859_v50 }
 0xe18   : > { %v1302_v52 = vsel %vm1301_vm1, %v1251_v21, 0.0 }
 0xe19   : > { %v1303_v23 = vsel %vm768_vm6, %v1302_v52, 0.0 }
 0xe1a   : > { %1304 = vadd.xlane.f32.xlu0 %v1303_v23 }
 0xe21   : > { %v2047_v56 = vpop.eup %2046 }
 0xea7   : > { %v1305_v54 = vpop.xlane.xlu0 %1304 }
 0xea8   : > { %v1851_v55 = vadd.f32 -1.0, %v1305_v54  ;;  %v1589_v54 = vrot.slane %v1585_v51, %v2233_v33 }
 0xeaa   : > { %v1308_v58 = vmul.f32 %v2047_v56, %v1851_v55 }
 0xeac   : > { %v1309_v59 = vsub.f32 %v1251_v21, %v1308_v58 }
 0xeae   : > { %v2382_v60 = vmax.f32 %v1309_v59, 0.0 }
 0xeb0   : > { %v1313_v63 = vpack.c.bf16 %v2382_v60, %v2382_v60 }
 0xeb2   : > { %1968 = vmatmul.mubr.msk.bf16.vlgmr.msra.gmra.mrb[20].mxu1 %vm658_vm4, %v1313_v63 }
 0xeb3   : > { %1978 = vmatpush3.bf16.msra.mxu1 %v1443_v0  ;;  %1979 = vmatprep.mubr.msk.bf16.mxu1 %vm2067_vm0, %v2066_v1 }
 0xeb4   : > { %1989 = vmatprep.subr.bf16.mxu1 %v2066_v1 }
 0xf85   : > { %v1354_v3 = vpop.f32.mrb[20].mxu1 }
 0xf86   : > { %v1363_v4 = vrot.slane %v1354_v3, %v2233_v33  ;;  %v1969_v5 = vpop.f32.mrb[21].mxu1 }
 0xf87   : > { %v1357_v7 = vpop.f32.mrb[22].mxu1 }
 0xf88   : > { %v1367_v8 = vadd.f32 %v1365_v57, %v1363_v4  ;;  %v1970_v9 = vpop.f32.mrb[23].mxu1 }
 0xf8a   : > { %v1374_v10 = vadd.f32 %v1854_v6, %v1367_v8 }
 0xf8c   : > { %2048 = vtanh.f32 %v1374_v10 }
 0xf96   : > { %v2049_v12 = vpop.eup %2048 }
 0xf97   : > { %v1378_v2 = vpack.c.bf16 %v2049_v12, %v2049_v12 }
 0xf99   : > { %v1383_v24 = vsel %vm721_vm5, %v1378_v2, 0 }
 0xf9a   : > { %1972 = vmatpush3.bf16.xpose.msra.mxu0 %v1383_v24 }
 0xf9b   : > { %1983 = vmatprep.subr.bf16.mxu0 %v2066_v1 }
 0xfa1   : > { %1974 = vmatmul.mubr.msk.bf16.vlgmr.msra.gmra.mrb[28].mxu0 %vm721_vm5, %v1855_v13 }
 0xfa2   : > { %1984 = vmatpush3.bf16.msra.mxu0 %v2342_v53  ;;  %1985 = vmatprep.mubr.msk.bf16.mxu0 %vm2067_vm0, %v2066_v1 }
0x1074   : > { %v1419_v14 = vpop.f32.mrb[28].mxu0 }
0x1075   : > { %v1420_v15 = vadd.f32 %v1419_v14, %v2253_v48  ;;  %v1975_v16 = vpop.f32.mrb[29].mxu0 }
0x1076   : > { %v1422_v17 = vpop.f32.mrb[30].mxu0 }
0x1077   : > { %v1425_v19 = vsel %vm768_vm6, %v1420_v15, -inf  ;;  %v1976_v21 = vpop.f32.mrb[31].mxu0 }
0x1078   : > { %1426 = vmax.xlane.f32.xlu0 %v1425_v19 }
0x1105   : > { %v1427_v25 = vpop.xlane.xlu0 %1426 }
0x1106   : > { %v1428_v26 = vsub.f32 %v1420_v15, %v1427_v25 }
0x1108   : > { %v1429_v20 = vmul.f32 1.442695, %v1428_v26 }
0x110a   : > { %2050 = vpow2.f32 %v1429_v20 }
0x1114   : > { %v2051_v27 = vpop.eup %2050 }
0x1115   : > { %v1431_v28 = vsel %vm768_vm6, %v2051_v27, 0.0 }
0x1116   : > { %1432 = vadd.xlane.f32.xlu0 %v1431_v28 }
0x112c   : > { %1529 = vrot.lane.b32.xlu0 %v2211_v22, %s2075_s20 }
0x11a3   : > { %v1433_v53 = vpop.xlane.xlu0 %1432 }
0x11a4   : > { %2052 = vrcp.f32 %v1433_v53 }
0x11a7   : > { %v1530_v36 = vpop.permute.xlu0 %1529 }
0x11ae   : > { %v2053_v30 = vpop.eup %2052 }
0x11af   : > { %v1435_v34 = vmul.f32 %v2053_v30, %v2051_v27 }
0x11b1   : > { %v1436_v35 = vpack.c.bf16 %v1435_v34, %v1435_v34 }
0x11b3   : > { %1980 = vmatmul.mubr.msk.bf16.vlgmr.msra.gmra.mrb[24].mxu1 %vm658_vm4, %v1436_v35  ;;  %1986 = vmatmul.mubr.msk.bf16.vlgmr.msra.gmra.mrb[32].mxu0 %vm658_vm4, %v1436_v35 }
0x11b4   : > { %1991 = vmatprep.mubr.msk.bf16.mxu1 %vm2067_vm0, %v2066_v1 }
0x1286   : > { %v1479_v37 = vpop.f32.mrb[24].mxu1  ;;  %v1519_v38 = vpop.f32.mrb[32].mxu0 }
0x1287   : > { %v1643_v22 = vrot.slane %v1479_v37, 6  ;;  %v1528_v39 = vrot.slane %v1519_v38, %v2233_v33  ;;  %v1981_v41 = vpop.f32.mrb[25].mxu1  ;;  %v1987_v42 = vpop.f32.mrb[33].mxu0 }
0x1288   : > { %v1482_v43 = vpop.f32.mrb[26].mxu1  ;;  %v1522_v44 = vpop.f32.mrb[34].mxu0 }
0x1289   : > { %v1648_v45 = vsel %vm1647_vm2, %v2355_v62, %v1643_v22  ;;  %v1532_v46 = vadd.f32 %v1530_v36, %v1528_v39  ;;  %v1982_v31 = vpop.f32.mrb[27].mxu1  ;;  %v1988_v47 = vpop.f32.mrb[35].mxu0  ;;  %v1652_v36 = vrot.slane %v2382_v60, 7 }
0x128a   : > { %1650 = vst.msk [vmem:[%s466_s25] sm:$0x7] %vm1649_vm3, %v1648_v45 }
0x128b   : > { %v1533_v49 = vadd.f32 %v1854_v6, %v1532_v46  ;;  %v1657_v38 = vsel %vm1645_vm12, %v2307_v11, %v1652_v36 }
0x128d   : > { %2054 = vtanh.f32 %v1533_v49 }
0x1297   : > { %v2055_v52 = vpop.eup %2054 }
0x1298   : > { %v1535_v23 = vpack.c.bf16 %v2055_v52, %v2055_v52 }
0x129a   : > { %v1542_v55 = vsel %vm721_vm5, %v1535_v23, 0  ;;  %v1584_v56 = vunpack.c.l.bf16 %v1535_v23 }
0x129b   : > { %1990 = vmatpush3.bf16.xpose.msra.mxu1 %v1542_v55 }
0x129c   : > { %v1590_v62 = vmul.f32 %v1589_v54, %v1584_v56 }
0x129e   : > { %v1591_v57 = vsel %vm721_vm5, %v1590_v62, 0.0 }
0x129f   : > { %1592 = vadd.xlane.f32.xlu1 %v1591_v57 }
0x12a2   : > { %1992 = vmatmul.mubr.msk.bf16.vlgmr.msra.gmra.mrb[28].mxu1 %vm721_vm5, %v1859_v50 }
0x132c   : > { %v1593_v58 = vpop.xlane.xlu1 %1592 }
0x132d   : > { %v1594_v59 = vadd.f32 %v1593_v58, %v2285_v29 }
0x132f   : > { %1597 = vperm.xlu0 %2013, %v1594_v59  }
0x1375   : > { %v1578_v61 = vpop.f32.mrb[28].mxu1 }
0x1376   : > { %v1993_v63 = vpop.f32.mrb[29].mxu1  ;;  %v1579_v4 = vadd.f32 %v1578_v61, %v2253_v48 }
0x1377   : > { %v1581_v0 = vpop.f32.mrb[30].mxu1 }
0x1378   : > { %v1994_v3 = vpop.f32.mrb[31].mxu1  ;;  %v1603_v5 = vrot.slane %v1579_v4, %v2233_v33 }
0x13ae   : > { %v1598_v6 = vpop.permute.xlu0 %1597 }
0x13af   : > { %vm1604_vm0 = vcmp.ge.f32.partialorder %v1598_v6, %v1603_v5 }
0x13b0   : > { %vm1605_vm8 = vmor %vm1604_vm0, %vm480_vm7  ;;  %vm1665_vm7 = vcmask 392192  }
0x13b1   : > { %v1606_v7 = vsel %vm1605_vm8, 1.0, %v2066_v1 }
0x13b2   : > { %v1607_v8 = vsel %vm658_vm4, %v1606_v7, 0.0  ;;  %v1614_v29 = vmul.f32 %v1606_v7, %v1598_v6 }
0x13b3   : > { %v1608_v9 = vrot.slane %v1607_v8, 4 }
0x13b4   : > { %v1615_v10 = vsel %vm658_vm4, %v1614_v29, 0.0 }
0x13b5   : > { %v1609_v12 = vadd.f32 %v1608_v9, %v1607_v8  ;;  %v1616_v2 = vrot.slane %v1615_v10, 4 }
0x13b7   : > { %v1610_v24 = vrot.slane %v1609_v12, 2  ;;  %v1617_v48 = vadd.f32 %v1616_v2, %v1615_v10 }
0x13b9   : > { %v1611_v13 = vadd.f32 %v1610_v24, %v1609_v12  ;;  %v1618_v33 = vrot.slane %v1617_v48, 2 }
0x13bb   : > { %v1612_v14 = vrot.slane %v1611_v13, 1  ;;  %v1619_v15 = vadd.f32 %v1618_v33, %v1617_v48 }
0x13bd   : > { %v1613_v16 = vadd.f32 %v1612_v14, %v1611_v13  ;;  %v1620_v17 = vrot.slane %v1619_v15, 1 }
0x13bf   : > { %v1622_v32 = vmul.f32 %v1613_v16, %v1579_v4  ;;  %v1621_v40 = vadd.f32 %v1620_v17, %v1619_v15 }
0x13c1   : > { %v1623_v1 = vadd.f32 1.0, %v1622_v32 }
0x13c3   : > { %vm1624_vm5 = vcmp.gt.f32.partialorder %v1623_v1, %v1621_v40 }
0x13c4   : > { %v1625_v19 = vsel %vm1624_vm5, %v1613_v16, 0.0 }
0x13c5   : > { %v1626_v21 = vsel %vm768_vm6, %v1625_v19, -inf }
0x13c6   : > { %1627 = vmax.xlane.f32.xlu0 %v1626_v21 }
0x1453   : > { %v1628_v25 = vpop.xlane.xlu0 %1627 }
0x1454   : > { %vm1629_vm4 = vcmp.le.f32.partialorder %v1613_v16, %v1628_v25  ;;  %2056 = vrcp.f32 %v1628_v25 }
0x1455   : > { %v1630_v26 = vsel %vm1629_vm4, %v1579_v4, 0.0 }
0x1456   : > { %v1631_v20 = vsel %vm768_vm6, %v1630_v26, 0.0  ;;  %vm1659_vm6 = vcmask 59392  }
0x1457   : > { %1632 = vadd.xlane.f32.xlu1 %v1631_v20 }
0x145e   : > { %v2057_v53 = vpop.eup %2056 }
0x1468   : > { %1662 = vrot.lane.b32.xlu1 %v2199_v18, %s2070_s29  ;;  %s470_s29 = scalar_lea.vmem %s2466_s11, %s2174_s17 }
0x14e4   : > { %v1633_v27 = vpop.xlane.xlu1 %1632 }
0x14e5   : > { %v1861_v28 = vadd.f32 -1.0, %v1633_v27 }
0x14e7   : > { %v1636_v30 = vmul.f32 %v2057_v53, %v1861_v28 }
0x14e8   : > { %v1663_v34 = vpop.permute.xlu1 %1662 }
0x14e9   : > { %v1637_v35 = vsub.f32 %v1579_v4, %v1636_v30  ;;  %1666 = vst.msk [vmem:[%s474_s13] sm:$0xff] %vm1665_vm7, %v1663_v34 }
0x14eb   : > { %v1638_v37 = vmax.f32 %v1637_v35, 0.0 }
0x14ed   : > { %v1655_v18 = vrot.slane %v1638_v37, 6 }
0x14ef   : > { %v1658_v22 = vsel %vm1647_vm2, %v1657_v38, %v1655_v18 }
0x14f0   : > { %1660 = vst.msk [vmem:[%s470_s29] sm:$0x7] %vm1659_vm6, %v1658_v22 }
0x14f1 PF: > { %s23_s21 = sadd.s32 1, %s2064_s21  }
0x14f2   : > { %p20_p4 = scmp.ge.s32.totalorder %s23_s21, 4  }
0x14f4   :  { %22 = sbr.rel (!%p20_p4) target bundleno = 1 (0x1), region = 129 }

</bundles_post_ra>
